<compile_context>
chip_gen: v5e
topology: v5e:2x2
jax: 0.10.0
libtpu: 0.0.40
codegen_flags: <defaults>
</compile_context>

<pallas_src>
import functools

import jax
import jax.numpy as jnp
from jax import lax
from jax.experimental import pallas as pl
from jax.experimental.pallas import tpu as pltpu


def _attention_kernel(x_ref, wqkv_ref, wproj_ref, bproj_ref, o_ref, ctx_ref,
                      *, num_heads, seq_len, batch_block, scale):
    # x_ref: (batch_block * seq_len, C) rows for `batch_block` batch elements.
    c = x_ref.shape[-1]
    d = c // num_heads
    in_dtype = x_ref.dtype

    # QKV projection for the whole row block: one big MXU matmul, f32 accumulate.
    qkv = jnp.dot(x_ref[...], wqkv_ref[...],
                  preferred_element_type=jnp.float32)          # (rows, 3C) f32

    # Attention core: per (batch, head) 2-D dots on contiguous lane slices of
    # the QKV result.  Static slices -> no dynamic lane addressing, no reshape.
    for b in range(batch_block):
        r0 = b * seq_len
        q_blk = qkv[r0:r0 + seq_len, 0 * c:1 * c] * scale      # (N, C) f32
        k_blk = qkv[r0:r0 + seq_len, 1 * c:2 * c]              # (N, C) f32
        v_blk = qkv[r0:r0 + seq_len, 2 * c:3 * c]              # (N, C) f32
        for h in range(num_heads):
            lo, hi = h * d, (h + 1) * d
            q = q_blk[:, lo:hi]                                # (N, D) f32
            k = k_blk[:, lo:hi]                                # (N, D) f32
            v = v_blk[:, lo:hi]                                # (N, D) f32

            # scores = (q*scale) @ k^T (contraction over D), no explicit
            # transpose; kept in f32 for softmax numerics.
            s = lax.dot_general(q, k, (((1,), (1,)), ((), ())),
                                preferred_element_type=jnp.float32)  # (N, N)
            s = s - jnp.max(s, axis=-1, keepdims=True)
            p = jnp.exp(s)
            inv = pl.reciprocal(jnp.sum(p, axis=-1, keepdims=True),
                                approx=True)                   # (N, 1), EUP

            # P@V on the MXU in the input dtype (no-op casts for f32 inputs);
            # normalize the (N, D) context instead of the (N, N) probs.
            ctx_h = jnp.dot(p.astype(in_dtype), v.astype(in_dtype),
                            preferred_element_type=jnp.float32) * inv
            ctx_ref[r0:r0 + seq_len, lo:hi] = ctx_h            # (N, D)

    # Output projection on the whole row block (+ bias, hoisted out of the
    # head loop), then one lane-dense store to the HBM output tile.
    ctx = ctx_ref[...].astype(in_dtype)
    out = jnp.dot(ctx, wproj_ref[...], preferred_element_type=jnp.float32)
    out = out + bproj_ref[...].astype(jnp.float32)             # (rows, C)
    o_ref[...] = out.astype(o_ref.dtype)


def _pick_batch_block(batch, seq_len, channels, itemsize,
                      vmem_budget=6 * 1024 * 1024):
    """Largest divisor of `batch` whose per-step live tiles fit the budget."""
    best = 1
    for bb in range(1, batch + 1):
        if batch % bb != 0:
            continue
        rows = bb * seq_len
        if rows % 8 != 0 and bb != batch:
            continue  # keep (rows, C) blocks sublane-aligned
        # double-buffered x + out tiles (native dtype) + qkv value (3C, f32)
        # + ctx scratch (f32).
        live = rows * channels * (2 * 2 * itemsize + 3 * 4 + 4)
        if live <= vmem_budget:
            best = bb
    return best


def attention_pallas(x, w_qkv, w_proj, b_proj, *, num_heads, batch_block=None):
    B, N, C = x.shape
    assert C % num_heads == 0
    D = C // num_heads
    scale = D ** (-0.5)

    if batch_block is None:
        batch_block = _pick_batch_block(B, N, C, x.dtype.itemsize)
    assert B % batch_block == 0
    rows = batch_block * N

    # Fold batch/sequence into rows at the boundary (free metadata reshape);
    # gives large M for the projection matmuls and lane-dense output tiles.
    x2 = x.reshape(B * N, C)
    b2 = b_proj.reshape(1, C)

    kernel = functools.partial(_attention_kernel,
                               num_heads=num_heads, seq_len=N,
                               batch_block=batch_block, scale=scale)

    out2 = pl.pallas_call(
        kernel,
        out_shape=jax.ShapeDtypeStruct((B * N, C), x.dtype),
        grid_spec=pltpu.PrefetchScalarGridSpec(
            num_scalar_prefetch=0,
            grid=(B // batch_block,),
            in_specs=[
                pl.BlockSpec((rows, C), lambda i: (i, 0)),      # x rows
                pl.BlockSpec((C, 3 * C), lambda i: (0, 0)),     # W_qkv (resident)
                pl.BlockSpec((C, C), lambda i: (0, 0)),         # W_proj (resident)
                pl.BlockSpec((1, C), lambda i: (0, 0)),         # b_proj (resident)
            ],
            out_specs=pl.BlockSpec((rows, C), lambda i: (i, 0)),
            scratch_shapes=[pltpu.VMEM((rows, C), jnp.float32)],  # ctx buffer
        ),
        compiler_params=pltpu.CompilerParams(
            dimension_semantics=("parallel",),
            vmem_limit_bytes=32 * 1024 * 1024),
    )(x2, w_qkv, w_proj, b2)

    return out2.reshape(B, N, C)


def attention_reference(x, w_qkv, w_proj, b_proj, *, num_heads):
    """Plain-JAX reference mirroring the PyTorch forward exactly."""
    B, N, C = x.shape
    D = C // num_heads
    scale = D ** (-0.5)
    qkv = x @ w_qkv                                        # (B, N, 3C)
    qkv = qkv.reshape(B, N, 3, num_heads, D)
    qkv = jnp.transpose(qkv, (2, 0, 3, 1, 4))              # (3, B, H, N, D)
    q, k, v = qkv[0], qkv[1], qkv[2]
    attn = (q @ jnp.swapaxes(k, -2, -1)) * scale           # (B, H, N, N)
    attn = jax.nn.softmax(attn, axis=-1)
    out = attn @ v                                         # (B, H, N, D)
    out = jnp.transpose(out, (0, 2, 1, 3)).reshape(B, N, C)
    return out @ w_proj + b_proj


if __name__ == "__main__":
    # Small shapes consistent with the module: dim=C=128, num_heads=8 -> D=16.
    B, N, C, H = 2, 16, 128, 8

    key = jax.random.PRNGKey(0)
    kx, kqkv, kproj, kb = jax.random.split(key, 4)

    x = jax.random.normal(kx, (B, N, C), dtype=jnp.float32)
    # Deterministic synthetic parameters (qkv_bias=False -> no qkv bias).
    w_qkv = jax.random.normal(kqkv, (C, 3 * C), dtype=jnp.float32) * (C ** -0.5)
    w_proj = jax.random.normal(kproj, (C, C), dtype=jnp.float32) * (C ** -0.5)
    b_proj = jax.random.normal(kb, (C,), dtype=jnp.float32) * 0.02

    out = attention_pallas(x, w_qkv, w_proj, b_proj, num_heads=H)
    out = jax.block_until_ready(out)

    ref = attention_reference(x, w_qkv, w_proj, b_proj, num_heads=H)
    assert out.shape == (B, N, C)
    # approx reciprocal in the softmax -> ~1e-3-level relative error budget.
    assert jnp.allclose(out, ref, atol=1e-2, rtol=1e-2), "mismatch vs reference"

    print("KERNEL_OK")
</pallas_src>

<mosaic_0001>
module attributes {stable_mosaic.version = 11 : i64} {
  func.func @_attention_kernel(%arg0: i32, %arg1: memref<32x128xf32, #tpu.memory_space<vmem>>, %arg2: memref<128x384xf32, #tpu.memory_space<vmem>>, %arg3: memref<128x128xf32, #tpu.memory_space<vmem>>, %arg4: memref<1x128xf32, #tpu.memory_space<vmem>>, %arg5: memref<32x128xf32, #tpu.memory_space<vmem>>, %arg6: memref<32x128xf32, #tpu.memory_space<vmem>>) attributes {dimension_semantics = [#tpu.dimension_semantics<parallel>], iteration_bounds = array<i64: 1>, scalar_prefetch = 0 : i64, scratch_operands = 1 : i64, tpu.core_type = #tpu.core_type<tc>, window_params = [{transform_indices = @transform_0, window_bounds = array<i64: 32, 128>}, {pipeline_mode = #tpu.pipeline_mode<synchronous>, transform_indices = @transform_1, window_bounds = array<i64: 128, 384>}, {pipeline_mode = #tpu.pipeline_mode<synchronous>, transform_indices = @transform_2, window_bounds = array<i64: 128, 128>}, {pipeline_mode = #tpu.pipeline_mode<synchronous>, transform_indices = @transform_3, window_bounds = array<i64: 1, 128>}, {transform_indices = @transform_4, window_bounds = array<i64: 32, 128>}]} {
    %c0 = arith.constant 0 : index
    %c0_0 = arith.constant 0 : index
    %0 = vector.load %arg1[%c0, %c0_0] : memref<32x128xf32, #tpu.memory_space<vmem>>, vector<32x128xf32>
    %c0_1 = arith.constant 0 : index
    %c0_2 = arith.constant 0 : index
    %1 = vector.load %arg2[%c0_1, %c0_2] : memref<128x384xf32, #tpu.memory_space<vmem>>, vector<128x384xf32>
    %cst = arith.constant dense<0.000000e+00> : vector<32x384xf32>
    %2 = tpu.matmul %0, %1, %cst {dimension_numbers = #tpu.dot_dimension_numbers<[1], [0], [0], [1], [0, 0, 1, 1], [], []>} : vector<32x128xf32>, vector<128x384xf32>, vector<32x384xf32> -> vector<32x384xf32>
    %3 = vector.extract_strided_slice %2 {offsets = [0, 0], sizes = [16, 128], strides = [1, 1]} : vector<32x384xf32> to vector<16x128xf32>
    %cst_3 = arith.constant 2.500000e-01 : f32
    %4 = vector.broadcast %cst_3 : f32 to vector<16x128xf32>
    %5 = arith.mulf %3, %4 : vector<16x128xf32>
    %6 = vector.extract_strided_slice %2 {offsets = [0, 128], sizes = [16, 128], strides = [1, 1]} : vector<32x384xf32> to vector<16x128xf32>
    %7 = vector.extract_strided_slice %2 {offsets = [0, 256], sizes = [16, 128], strides = [1, 1]} : vector<32x384xf32> to vector<16x128xf32>
    %8 = vector.extract_strided_slice %5 {offsets = [0, 0], sizes = [16, 16], strides = [1, 1]} : vector<16x128xf32> to vector<16x16xf32>
    %9 = vector.extract_strided_slice %6 {offsets = [0, 0], sizes = [16, 16], strides = [1, 1]} : vector<16x128xf32> to vector<16x16xf32>
    %10 = vector.extract_strided_slice %7 {offsets = [0, 0], sizes = [16, 16], strides = [1, 1]} : vector<16x128xf32> to vector<16x16xf32>
    %cst_4 = arith.constant dense<0.000000e+00> : vector<16x16xf32>
    %11 = tpu.matmul %8, %9, %cst_4 {dimension_numbers = #tpu.dot_dimension_numbers<[1], [1], [0], [0], [0, 0, 1, 0], [], []>} : vector<16x16xf32>, vector<16x16xf32>, vector<16x16xf32> -> vector<16x16xf32>
    %cst_5 = arith.constant dense<0xFF800000> : vector<16xf32>
    %12 = vector.multi_reduction <maximumf>, %11, %cst_5 [1] : vector<16x16xf32> to vector<16xf32>
    %13 = vector.shape_cast %12 : vector<16xf32> to vector<16x1xf32>
    %14 = vector.broadcast %13 : vector<16x1xf32> to vector<16x16xf32>
    %15 = arith.subf %11, %14 : vector<16x16xf32>
    %16 = math.exp %15 : vector<16x16xf32>
    %cst_6 = arith.constant dense<0.000000e+00> : vector<16xf32>
    %17 = vector.multi_reduction <add>, %16, %cst_6 [1] : vector<16x16xf32> to vector<16xf32>
    %18 = vector.shape_cast %17 : vector<16xf32> to vector<16x1xf32>
    %19 = tpu.reciprocal %18 {approx = true} : vector<16x1xf32> -> vector<16x1xf32>
    %cst_7 = arith.constant dense<0.000000e+00> : vector<16x16xf32>
    %20 = tpu.matmul %16, %10, %cst_7 {dimension_numbers = #tpu.dot_dimension_numbers<[1], [0], [0], [1], [0, 0, 1, 1], [], []>} : vector<16x16xf32>, vector<16x16xf32>, vector<16x16xf32> -> vector<16x16xf32>
    %21 = vector.broadcast %19 : vector<16x1xf32> to vector<16x16xf32>
    %22 = arith.mulf %20, %21 : vector<16x16xf32>
    %c0_8 = arith.constant 0 : index
    %c0_9 = arith.constant 0 : index
    %23 = vector.load %arg6[%c0_8, %c0_9] : memref<32x128xf32, #tpu.memory_space<vmem>>, vector<16x16xf32>
    tpu.vector_store %arg6[%c0_8, %c0_9], %22 {strides = array<i32>} : memref<32x128xf32, #tpu.memory_space<vmem>>, vector<16x16xf32>,
    %24 = vector.extract_strided_slice %5 {offsets = [0, 16], sizes = [16, 16], strides = [1, 1]} : vector<16x128xf32> to vector<16x16xf32>
    %25 = vector.extract_strided_slice %6 {offsets = [0, 16], sizes = [16, 16], strides = [1, 1]} : vector<16x128xf32> to vector<16x16xf32>
    %26 = vector.extract_strided_slice %7 {offsets = [0, 16], sizes = [16, 16], strides = [1, 1]} : vector<16x128xf32> to vector<16x16xf32>
    %cst_10 = arith.constant dense<0.000000e+00> : vector<16x16xf32>
    %27 = tpu.matmul %24, %25, %cst_10 {dimension_numbers = #tpu.dot_dimension_numbers<[1], [1], [0], [0], [0, 0, 1, 0], [], []>} : vector<16x16xf32>, vector<16x16xf32>, vector<16x16xf32> -> vector<16x16xf32>
    %cst_11 = arith.constant dense<0xFF800000> : vector<16xf32>
    %28 = vector.multi_reduction <maximumf>, %27, %cst_11 [1] : vector<16x16xf32> to vector<16xf32>
    %29 = vector.shape_cast %28 : vector<16xf32> to vector<16x1xf32>
    %30 = vector.broadcast %29 : vector<16x1xf32> to vector<16x16xf32>
    %31 = arith.subf %27, %30 : vector<16x16xf32>
    %32 = math.exp %31 : vector<16x16xf32>
    %cst_12 = arith.constant dense<0.000000e+00> : vector<16xf32>
    %33 = vector.multi_reduction <add>, %32, %cst_12 [1] : vector<16x16xf32> to vector<16xf32>
    %34 = vector.shape_cast %33 : vector<16xf32> to vector<16x1xf32>
    %35 = tpu.reciprocal %34 {approx = true} : vector<16x1xf32> -> vector<16x1xf32>
    %cst_13 = arith.constant dense<0.000000e+00> : vector<16x16xf32>
    %36 = tpu.matmul %32, %26, %cst_13 {dimension_numbers = #tpu.dot_dimension_numbers<[1], [0], [0], [1], [0, 0, 1, 1], [], []>} : vector<16x16xf32>, vector<16x16xf32>, vector<16x16xf32> -> vector<16x16xf32>
    %37 = vector.broadcast %35 : vector<16x1xf32> to vector<16x16xf32>
    %38 = arith.mulf %36, %37 : vector<16x16xf32>
    %c0_14 = arith.constant 0 : index
    %c16 = arith.constant 16 : index
    %39 = vector.load %arg6[%c0_14, %c16] : memref<32x128xf32, #tpu.memory_space<vmem>>, vector<16x16xf32>
    tpu.vector_store %arg6[%c0_14, %c16], %38 {strides = array<i32>} : memref<32x128xf32, #tpu.memory_space<vmem>>, vector<16x16xf32>,
    %40 = vector.extract_strided_slice %5 {offsets = [0, 32], sizes = [16, 16], strides = [1, 1]} : vector<16x128xf32> to vector<16x16xf32>
    %41 = vector.extract_strided_slice %6 {offsets = [0, 32], sizes = [16, 16], strides = [1, 1]} : vector<16x128xf32> to vector<16x16xf32>
    %42 = vector.extract_strided_slice %7 {offsets = [0, 32], sizes = [16, 16], strides = [1, 1]} : vector<16x128xf32> to vector<16x16xf32>
    %cst_15 = arith.constant dense<0.000000e+00> : vector<16x16xf32>
    %43 = tpu.matmul %40, %41, %cst_15 {dimension_numbers = #tpu.dot_dimension_numbers<[1], [1], [0], [0], [0, 0, 1, 0], [], []>} : vector<16x16xf32>, vector<16x16xf32>, vector<16x16xf32> -> vector<16x16xf32>
    %cst_16 = arith.constant dense<0xFF800000> : vector<16xf32>
    %44 = vector.multi_reduction <maximumf>, %43, %cst_16 [1] : vector<16x16xf32> to vector<16xf32>
    %45 = vector.shape_cast %44 : vector<16xf32> to vector<16x1xf32>
    %46 = vector.broadcast %45 : vector<16x1xf32> to vector<16x16xf32>
    %47 = arith.subf %43, %46 : vector<16x16xf32>
    %48 = math.exp %47 : vector<16x16xf32>
    %cst_17 = arith.constant dense<0.000000e+00> : vector<16xf32>
    %49 = vector.multi_reduction <add>, %48, %cst_17 [1] : vector<16x16xf32> to vector<16xf32>
    %50 = vector.shape_cast %49 : vector<16xf32> to vector<16x1xf32>
    %51 = tpu.reciprocal %50 {approx = true} : vector<16x1xf32> -> vector<16x1xf32>
    %cst_18 = arith.constant dense<0.000000e+00> : vector<16x16xf32>
    %52 = tpu.matmul %48, %42, %cst_18 {dimension_numbers = #tpu.dot_dimension_numbers<[1], [0], [0], [1], [0, 0, 1, 1], [], []>} : vector<16x16xf32>, vector<16x16xf32>, vector<16x16xf32> -> vector<16x16xf32>
    %53 = vector.broadcast %51 : vector<16x1xf32> to vector<16x16xf32>
    %54 = arith.mulf %52, %53 : vector<16x16xf32>
    %c0_19 = arith.constant 0 : index
    %c32 = arith.constant 32 : index
    %55 = vector.load %arg6[%c0_19, %c32] : memref<32x128xf32, #tpu.memory_space<vmem>>, vector<16x16xf32>
    tpu.vector_store %arg6[%c0_19, %c32], %54 {strides = array<i32>} : memref<32x128xf32, #tpu.memory_space<vmem>>, vector<16x16xf32>,
    %56 = vector.extract_strided_slice %5 {offsets = [0, 48], sizes = [16, 16], strides = [1, 1]} : vector<16x128xf32> to vector<16x16xf32>
    %57 = vector.extract_strided_slice %6 {offsets = [0, 48], sizes = [16, 16], strides = [1, 1]} : vector<16x128xf32> to vector<16x16xf32>
    %58 = vector.extract_strided_slice %7 {offsets = [0, 48], sizes = [16, 16], strides = [1, 1]} : vector<16x128xf32> to vector<16x16xf32>
    %cst_20 = arith.constant dense<0.000000e+00> : vector<16x16xf32>
    %59 = tpu.matmul %56, %57, %cst_20 {dimension_numbers = #tpu.dot_dimension_numbers<[1], [1], [0], [0], [0, 0, 1, 0], [], []>} : vector<16x16xf32>, vector<16x16xf32>, vector<16x16xf32> -> vector<16x16xf32>
    %cst_21 = arith.constant dense<0xFF800000> : vector<16xf32>
    %60 = vector.multi_reduction <maximumf>, %59, %cst_21 [1] : vector<16x16xf32> to vector<16xf32>
    %61 = vector.shape_cast %60 : vector<16xf32> to vector<16x1xf32>
    %62 = vector.broadcast %61 : vector<16x1xf32> to vector<16x16xf32>
    %63 = arith.subf %59, %62 : vector<16x16xf32>
    %64 = math.exp %63 : vector<16x16xf32>
    %cst_22 = arith.constant dense<0.000000e+00> : vector<16xf32>
    %65 = vector.multi_reduction <add>, %64, %cst_22 [1] : vector<16x16xf32> to vector<16xf32>
    %66 = vector.shape_cast %65 : vector<16xf32> to vector<16x1xf32>
    %67 = tpu.reciprocal %66 {approx = true} : vector<16x1xf32> -> vector<16x1xf32>
    %cst_23 = arith.constant dense<0.000000e+00> : vector<16x16xf32>
    %68 = tpu.matmul %64, %58, %cst_23 {dimension_numbers = #tpu.dot_dimension_numbers<[1], [0], [0], [1], [0, 0, 1, 1], [], []>} : vector<16x16xf32>, vector<16x16xf32>, vector<16x16xf32> -> vector<16x16xf32>
    %69 = vector.broadcast %67 : vector<16x1xf32> to vector<16x16xf32>
    %70 = arith.mulf %68, %69 : vector<16x16xf32>
    %c0_24 = arith.constant 0 : index
    %c48 = arith.constant 48 : index
    %71 = vector.load %arg6[%c0_24, %c48] : memref<32x128xf32, #tpu.memory_space<vmem>>, vector<16x16xf32>
    tpu.vector_store %arg6[%c0_24, %c48], %70 {strides = array<i32>} : memref<32x128xf32, #tpu.memory_space<vmem>>, vector<16x16xf32>,
    %72 = vector.extract_strided_slice %5 {offsets = [0, 64], sizes = [16, 16], strides = [1, 1]} : vector<16x128xf32> to vector<16x16xf32>
    %73 = vector.extract_strided_slice %6 {offsets = [0, 64], sizes = [16, 16], strides = [1, 1]} : vector<16x128xf32> to vector<16x16xf32>
    %74 = vector.extract_strided_slice %7 {offsets = [0, 64], sizes = [16, 16], strides = [1, 1]} : vector<16x128xf32> to vector<16x16xf32>
    %cst_25 = arith.constant dense<0.000000e+00> : vector<16x16xf32>
    %75 = tpu.matmul %72, %73, %cst_25 {dimension_numbers = #tpu.dot_dimension_numbers<[1], [1], [0], [0], [0, 0, 1, 0], [], []>} : vector<16x16xf32>, vector<16x16xf32>, vector<16x16xf32> -> vector<16x16xf32>
    %cst_26 = arith.constant dense<0xFF800000> : vector<16xf32>
    %76 = vector.multi_reduction <maximumf>, %75, %cst_26 [1] : vector<16x16xf32> to vector<16xf32>
    %77 = vector.shape_cast %76 : vector<16xf32> to vector<16x1xf32>
    %78 = vector.broadcast %77 : vector<16x1xf32> to vector<16x16xf32>
    %79 = arith.subf %75, %78 : vector<16x16xf32>
    %80 = math.exp %79 : vector<16x16xf32>
    %cst_27 = arith.constant dense<0.000000e+00> : vector<16xf32>
    %81 = vector.multi_reduction <add>, %80, %cst_27 [1] : vector<16x16xf32> to vector<16xf32>
    %82 = vector.shape_cast %81 : vector<16xf32> to vector<16x1xf32>
    %83 = tpu.reciprocal %82 {approx = true} : vector<16x1xf32> -> vector<16x1xf32>
    %cst_28 = arith.constant dense<0.000000e+00> : vector<16x16xf32>
    %84 = tpu.matmul %80, %74, %cst_28 {dimension_numbers = #tpu.dot_dimension_numbers<[1], [0], [0], [1], [0, 0, 1, 1], [], []>} : vector<16x16xf32>, vector<16x16xf32>, vector<16x16xf32> -> vector<16x16xf32>
    %85 = vector.broadcast %83 : vector<16x1xf32> to vector<16x16xf32>
    %86 = arith.mulf %84, %85 : vector<16x16xf32>
    %c0_29 = arith.constant 0 : index
    %c64 = arith.constant 64 : index
    %87 = vector.load %arg6[%c0_29, %c64] : memref<32x128xf32, #tpu.memory_space<vmem>>, vector<16x16xf32>
    tpu.vector_store %arg6[%c0_29, %c64], %86 {strides = array<i32>} : memref<32x128xf32, #tpu.memory_space<vmem>>, vector<16x16xf32>,
    %88 = vector.extract_strided_slice %5 {offsets = [0, 80], sizes = [16, 16], strides = [1, 1]} : vector<16x128xf32> to vector<16x16xf32>
    %89 = vector.extract_strided_slice %6 {offsets = [0, 80], sizes = [16, 16], strides = [1, 1]} : vector<16x128xf32> to vector<16x16xf32>
    %90 = vector.extract_strided_slice %7 {offsets = [0, 80], sizes = [16, 16], strides = [1, 1]} : vector<16x128xf32> to vector<16x16xf32>
    %cst_30 = arith.constant dense<0.000000e+00> : vector<16x16xf32>
    %91 = tpu.matmul %88, %89, %cst_30 {dimension_numbers = #tpu.dot_dimension_numbers<[1], [1], [0], [0], [0, 0, 1, 0], [], []>} : vector<16x16xf32>, vector<16x16xf32>, vector<16x16xf32> -> vector<16x16xf32>
    %cst_31 = arith.constant dense<0xFF800000> : vector<16xf32>
    %92 = vector.multi_reduction <maximumf>, %91, %cst_31 [1] : vector<16x16xf32> to vector<16xf32>
    %93 = vector.shape_cast %92 : vector<16xf32> to vector<16x1xf32>
    %94 = vector.broadcast %93 : vector<16x1xf32> to vector<16x16xf32>
    %95 = arith.subf %91, %94 : vector<16x16xf32>
    %96 = math.exp %95 : vector<16x16xf32>
    %cst_32 = arith.constant dense<0.000000e+00> : vector<16xf32>
    %97 = vector.multi_reduction <add>, %96, %cst_32 [1] : vector<16x16xf32> to vector<16xf32>
    %98 = vector.shape_cast %97 : vector<16xf32> to vector<16x1xf32>
    %99 = tpu.reciprocal %98 {approx = true} : vector<16x1xf32> -> vector<16x1xf32>
    %cst_33 = arith.constant dense<0.000000e+00> : vector<16x16xf32>
    %100 = tpu.matmul %96, %90, %cst_33 {dimension_numbers = #tpu.dot_dimension_numbers<[1], [0], [0], [1], [0, 0, 1, 1], [], []>} : vector<16x16xf32>, vector<16x16xf32>, vector<16x16xf32> -> vector<16x16xf32>
    %101 = vector.broadcast %99 : vector<16x1xf32> to vector<16x16xf32>
    %102 = arith.mulf %100, %101 : vector<16x16xf32>
    %c0_34 = arith.constant 0 : index
    %c80 = arith.constant 80 : index
    %103 = vector.load %arg6[%c0_34, %c80] : memref<32x128xf32, #tpu.memory_space<vmem>>, vector<16x16xf32>
    tpu.vector_store %arg6[%c0_34, %c80], %102 {strides = array<i32>} : memref<32x128xf32, #tpu.memory_space<vmem>>, vector<16x16xf32>,
    %104 = vector.extract_strided_slice %5 {offsets = [0, 96], sizes = [16, 16], strides = [1, 1]} : vector<16x128xf32> to vector<16x16xf32>
    %105 = vector.extract_strided_slice %6 {offsets = [0, 96], sizes = [16, 16], strides = [1, 1]} : vector<16x128xf32> to vector<16x16xf32>
    %106 = vector.extract_strided_slice %7 {offsets = [0, 96], sizes = [16, 16], strides = [1, 1]} : vector<16x128xf32> to vector<16x16xf32>
    %cst_35 = arith.constant dense<0.000000e+00> : vector<16x16xf32>
    %107 = tpu.matmul %104, %105, %cst_35 {dimension_numbers = #tpu.dot_dimension_numbers<[1], [1], [0], [0], [0, 0, 1, 0], [], []>} : vector<16x16xf32>, vector<16x16xf32>, vector<16x16xf32> -> vector<16x16xf32>
    %cst_36 = arith.constant dense<0xFF800000> : vector<16xf32>
    %108 = vector.multi_reduction <maximumf>, %107, %cst_36 [1] : vector<16x16xf32> to vector<16xf32>
    %109 = vector.shape_cast %108 : vector<16xf32> to vector<16x1xf32>
    %110 = vector.broadcast %109 : vector<16x1xf32> to vector<16x16xf32>
    %111 = arith.subf %107, %110 : vector<16x16xf32>
    %112 = math.exp %111 : vector<16x16xf32>
    %cst_37 = arith.constant dense<0.000000e+00> : vector<16xf32>
    %113 = vector.multi_reduction <add>, %112, %cst_37 [1] : vector<16x16xf32> to vector<16xf32>
    %114 = vector.shape_cast %113 : vector<16xf32> to vector<16x1xf32>
    %115 = tpu.reciprocal %114 {approx = true} : vector<16x1xf32> -> vector<16x1xf32>
    %cst_38 = arith.constant dense<0.000000e+00> : vector<16x16xf32>
    %116 = tpu.matmul %112, %106, %cst_38 {dimension_numbers = #tpu.dot_dimension_numbers<[1], [0], [0], [1], [0, 0, 1, 1], [], []>} : vector<16x16xf32>, vector<16x16xf32>, vector<16x16xf32> -> vector<16x16xf32>
    %117 = vector.broadcast %115 : vector<16x1xf32> to vector<16x16xf32>
    %118 = arith.mulf %116, %117 : vector<16x16xf32>
    %c0_39 = arith.constant 0 : index
    %c96 = arith.constant 96 : index
    %119 = vector.load %arg6[%c0_39, %c96] : memref<32x128xf32, #tpu.memory_space<vmem>>, vector<16x16xf32>
    tpu.vector_store %arg6[%c0_39, %c96], %118 {strides = array<i32>} : memref<32x128xf32, #tpu.memory_space<vmem>>, vector<16x16xf32>,
    %120 = vector.extract_strided_slice %5 {offsets = [0, 112], sizes = [16, 16], strides = [1, 1]} : vector<16x128xf32> to vector<16x16xf32>
    %121 = vector.extract_strided_slice %6 {offsets = [0, 112], sizes = [16, 16], strides = [1, 1]} : vector<16x128xf32> to vector<16x16xf32>
    %122 = vector.extract_strided_slice %7 {offsets = [0, 112], sizes = [16, 16], strides = [1, 1]} : vector<16x128xf32> to vector<16x16xf32>
    %cst_40 = arith.constant dense<0.000000e+00> : vector<16x16xf32>
    %123 = tpu.matmul %120, %121, %cst_40 {dimension_numbers = #tpu.dot_dimension_numbers<[1], [1], [0], [0], [0, 0, 1, 0], [], []>} : vector<16x16xf32>, vector<16x16xf32>, vector<16x16xf32> -> vector<16x16xf32>
    %cst_41 = arith.constant dense<0xFF800000> : vector<16xf32>
    %124 = vector.multi_reduction <maximumf>, %123, %cst_41 [1] : vector<16x16xf32> to vector<16xf32>
    %125 = vector.shape_cast %124 : vector<16xf32> to vector<16x1xf32>
    %126 = vector.broadcast %125 : vector<16x1xf32> to vector<16x16xf32>
    %127 = arith.subf %123, %126 : vector<16x16xf32>
    %128 = math.exp %127 : vector<16x16xf32>
    %cst_42 = arith.constant dense<0.000000e+00> : vector<16xf32>
    %129 = vector.multi_reduction <add>, %128, %cst_42 [1] : vector<16x16xf32> to vector<16xf32>
    %130 = vector.shape_cast %129 : vector<16xf32> to vector<16x1xf32>
    %131 = tpu.reciprocal %130 {approx = true} : vector<16x1xf32> -> vector<16x1xf32>
    %cst_43 = arith.constant dense<0.000000e+00> : vector<16x16xf32>
    %132 = tpu.matmul %128, %122, %cst_43 {dimension_numbers = #tpu.dot_dimension_numbers<[1], [0], [0], [1], [0, 0, 1, 1], [], []>} : vector<16x16xf32>, vector<16x16xf32>, vector<16x16xf32> -> vector<16x16xf32>
    %133 = vector.broadcast %131 : vector<16x1xf32> to vector<16x16xf32>
    %134 = arith.mulf %132, %133 : vector<16x16xf32>
    %c0_44 = arith.constant 0 : index
    %c112 = arith.constant 112 : index
    %135 = vector.load %arg6[%c0_44, %c112] : memref<32x128xf32, #tpu.memory_space<vmem>>, vector<16x16xf32>
    tpu.vector_store %arg6[%c0_44, %c112], %134 {strides = array<i32>} : memref<32x128xf32, #tpu.memory_space<vmem>>, vector<16x16xf32>,
    %136 = vector.extract_strided_slice %2 {offsets = [16, 0], sizes = [16, 128], strides = [1, 1]} : vector<32x384xf32> to vector<16x128xf32>
    %cst_45 = arith.constant 2.500000e-01 : f32
    %137 = vector.broadcast %cst_45 : f32 to vector<16x128xf32>
    %138 = arith.mulf %136, %137 : vector<16x128xf32>
    %139 = vector.extract_strided_slice %2 {offsets = [16, 128], sizes = [16, 128], strides = [1, 1]} : vector<32x384xf32> to vector<16x128xf32>
    %140 = vector.extract_strided_slice %2 {offsets = [16, 256], sizes = [16, 128], strides = [1, 1]} : vector<32x384xf32> to vector<16x128xf32>
    %141 = vector.extract_strided_slice %138 {offsets = [0, 0], sizes = [16, 16], strides = [1, 1]} : vector<16x128xf32> to vector<16x16xf32>
    %142 = vector.extract_strided_slice %139 {offsets = [0, 0], sizes = [16, 16], strides = [1, 1]} : vector<16x128xf32> to vector<16x16xf32>
    %143 = vector.extract_strided_slice %140 {offsets = [0, 0], sizes = [16, 16], strides = [1, 1]} : vector<16x128xf32> to vector<16x16xf32>
    %cst_46 = arith.constant dense<0.000000e+00> : vector<16x16xf32>
    %144 = tpu.matmul %141, %142, %cst_46 {dimension_numbers = #tpu.dot_dimension_numbers<[1], [1], [0], [0], [0, 0, 1, 0], [], []>} : vector<16x16xf32>, vector<16x16xf32>, vector<16x16xf32> -> vector<16x16xf32>
    %cst_47 = arith.constant dense<0xFF800000> : vector<16xf32>
    %145 = vector.multi_reduction <maximumf>, %144, %cst_47 [1] : vector<16x16xf32> to vector<16xf32>
    %146 = vector.shape_cast %145 : vector<16xf32> to vector<16x1xf32>
    %147 = vector.broadcast %146 : vector<16x1xf32> to vector<16x16xf32>
    %148 = arith.subf %144, %147 : vector<16x16xf32>
    %149 = math.exp %148 : vector<16x16xf32>
    %cst_48 = arith.constant dense<0.000000e+00> : vector<16xf32>
    %150 = vector.multi_reduction <add>, %149, %cst_48 [1] : vector<16x16xf32> to vector<16xf32>
    %151 = vector.shape_cast %150 : vector<16xf32> to vector<16x1xf32>
    %152 = tpu.reciprocal %151 {approx = true} : vector<16x1xf32> -> vector<16x1xf32>
    %cst_49 = arith.constant dense<0.000000e+00> : vector<16x16xf32>
    %153 = tpu.matmul %149, %143, %cst_49 {dimension_numbers = #tpu.dot_dimension_numbers<[1], [0], [0], [1], [0, 0, 1, 1], [], []>} : vector<16x16xf32>, vector<16x16xf32>, vector<16x16xf32> -> vector<16x16xf32>
    %154 = vector.broadcast %152 : vector<16x1xf32> to vector<16x16xf32>
    %155 = arith.mulf %153, %154 : vector<16x16xf32>
    %c16_50 = arith.constant 16 : index
    %c0_51 = arith.constant 0 : index
    %156 = vector.load %arg6[%c16_50, %c0_51] : memref<32x128xf32, #tpu.memory_space<vmem>>, vector<16x16xf32>
    tpu.vector_store %arg6[%c16_50, %c0_51], %155 {strides = array<i32>} : memref<32x128xf32, #tpu.memory_space<vmem>>, vector<16x16xf32>,
    %157 = vector.extract_strided_slice %138 {offsets = [0, 16], sizes = [16, 16], strides = [1, 1]} : vector<16x128xf32> to vector<16x16xf32>
    %158 = vector.extract_strided_slice %139 {offsets = [0, 16], sizes = [16, 16], strides = [1, 1]} : vector<16x128xf32> to vector<16x16xf32>
    %159 = vector.extract_strided_slice %140 {offsets = [0, 16], sizes = [16, 16], strides = [1, 1]} : vector<16x128xf32> to vector<16x16xf32>
    %cst_52 = arith.constant dense<0.000000e+00> : vector<16x16xf32>
    %160 = tpu.matmul %157, %158, %cst_52 {dimension_numbers = #tpu.dot_dimension_numbers<[1], [1], [0], [0], [0, 0, 1, 0], [], []>} : vector<16x16xf32>, vector<16x16xf32>, vector<16x16xf32> -> vector<16x16xf32>
    %cst_53 = arith.constant dense<0xFF800000> : vector<16xf32>
    %161 = vector.multi_reduction <maximumf>, %160, %cst_53 [1] : vector<16x16xf32> to vector<16xf32>
    %162 = vector.shape_cast %161 : vector<16xf32> to vector<16x1xf32>
    %163 = vector.broadcast %162 : vector<16x1xf32> to vector<16x16xf32>
    %164 = arith.subf %160, %163 : vector<16x16xf32>
    %165 = math.exp %164 : vector<16x16xf32>
    %cst_54 = arith.constant dense<0.000000e+00> : vector<16xf32>
    %166 = vector.multi_reduction <add>, %165, %cst_54 [1] : vector<16x16xf32> to vector<16xf32>
    %167 = vector.shape_cast %166 : vector<16xf32> to vector<16x1xf32>
    %168 = tpu.reciprocal %167 {approx = true} : vector<16x1xf32> -> vector<16x1xf32>
    %cst_55 = arith.constant dense<0.000000e+00> : vector<16x16xf32>
    %169 = tpu.matmul %165, %159, %cst_55 {dimension_numbers = #tpu.dot_dimension_numbers<[1], [0], [0], [1], [0, 0, 1, 1], [], []>} : vector<16x16xf32>, vector<16x16xf32>, vector<16x16xf32> -> vector<16x16xf32>
    %170 = vector.broadcast %168 : vector<16x1xf32> to vector<16x16xf32>
    %171 = arith.mulf %169, %170 : vector<16x16xf32>
    %c16_56 = arith.constant 16 : index
    %c16_57 = arith.constant 16 : index
    %172 = vector.load %arg6[%c16_56, %c16_57] : memref<32x128xf32, #tpu.memory_space<vmem>>, vector<16x16xf32>
    tpu.vector_store %arg6[%c16_56, %c16_57], %171 {strides = array<i32>} : memref<32x128xf32, #tpu.memory_space<vmem>>, vector<16x16xf32>,
    %173 = vector.extract_strided_slice %138 {offsets = [0, 32], sizes = [16, 16], strides = [1, 1]} : vector<16x128xf32> to vector<16x16xf32>
    %174 = vector.extract_strided_slice %139 {offsets = [0, 32], sizes = [16, 16], strides = [1, 1]} : vector<16x128xf32> to vector<16x16xf32>
    %175 = vector.extract_strided_slice %140 {offsets = [0, 32], sizes = [16, 16], strides = [1, 1]} : vector<16x128xf32> to vector<16x16xf32>
    %cst_58 = arith.constant dense<0.000000e+00> : vector<16x16xf32>
    %176 = tpu.matmul %173, %174, %cst_58 {dimension_numbers = #tpu.dot_dimension_numbers<[1], [1], [0], [0], [0, 0, 1, 0], [], []>} : vector<16x16xf32>, vector<16x16xf32>, vector<16x16xf32> -> vector<16x16xf32>
    %cst_59 = arith.constant dense<0xFF800000> : vector<16xf32>
    %177 = vector.multi_reduction <maximumf>, %176, %cst_59 [1] : vector<16x16xf32> to vector<16xf32>
    %178 = vector.shape_cast %177 : vector<16xf32> to vector<16x1xf32>
    %179 = vector.broadcast %178 : vector<16x1xf32> to vector<16x16xf32>
    %180 = arith.subf %176, %179 : vector<16x16xf32>
    %181 = math.exp %180 : vector<16x16xf32>
    %cst_60 = arith.constant dense<0.000000e+00> : vector<16xf32>
    %182 = vector.multi_reduction <add>, %181, %cst_60 [1] : vector<16x16xf32> to vector<16xf32>
    %183 = vector.shape_cast %182 : vector<16xf32> to vector<16x1xf32>
    %184 = tpu.reciprocal %183 {approx = true} : vector<16x1xf32> -> vector<16x1xf32>
    %cst_61 = arith.constant dense<0.000000e+00> : vector<16x16xf32>
    %185 = tpu.matmul %181, %175, %cst_61 {dimension_numbers = #tpu.dot_dimension_numbers<[1], [0], [0], [1], [0, 0, 1, 1], [], []>} : vector<16x16xf32>, vector<16x16xf32>, vector<16x16xf32> -> vector<16x16xf32>
    %186 = vector.broadcast %184 : vector<16x1xf32> to vector<16x16xf32>
    %187 = arith.mulf %185, %186 : vector<16x16xf32>
    %c16_62 = arith.constant 16 : index
    %c32_63 = arith.constant 32 : index
    %188 = vector.load %arg6[%c16_62, %c32_63] : memref<32x128xf32, #tpu.memory_space<vmem>>, vector<16x16xf32>
    tpu.vector_store %arg6[%c16_62, %c32_63], %187 {strides = array<i32>} : memref<32x128xf32, #tpu.memory_space<vmem>>, vector<16x16xf32>,
    %189 = vector.extract_strided_slice %138 {offsets = [0, 48], sizes = [16, 16], strides = [1, 1]} : vector<16x128xf32> to vector<16x16xf32>
    %190 = vector.extract_strided_slice %139 {offsets = [0, 48], sizes = [16, 16], strides = [1, 1]} : vector<16x128xf32> to vector<16x16xf32>
    %191 = vector.extract_strided_slice %140 {offsets = [0, 48], sizes = [16, 16], strides = [1, 1]} : vector<16x128xf32> to vector<16x16xf32>
    %cst_64 = arith.constant dense<0.000000e+00> : vector<16x16xf32>
    %192 = tpu.matmul %189, %190, %cst_64 {dimension_numbers = #tpu.dot_dimension_numbers<[1], [1], [0], [0], [0, 0, 1, 0], [], []>} : vector<16x16xf32>, vector<16x16xf32>, vector<16x16xf32> -> vector<16x16xf32>
    %cst_65 = arith.constant dense<0xFF800000> : vector<16xf32>
    %193 = vector.multi_reduction <maximumf>, %192, %cst_65 [1] : vector<16x16xf32> to vector<16xf32>
    %194 = vector.shape_cast %193 : vector<16xf32> to vector<16x1xf32>
    %195 = vector.broadcast %194 : vector<16x1xf32> to vector<16x16xf32>
    %196 = arith.subf %192, %195 : vector<16x16xf32>
    %197 = math.exp %196 : vector<16x16xf32>
    %cst_66 = arith.constant dense<0.000000e+00> : vector<16xf32>
    %198 = vector.multi_reduction <add>, %197, %cst_66 [1] : vector<16x16xf32> to vector<16xf32>
    %199 = vector.shape_cast %198 : vector<16xf32> to vector<16x1xf32>
    %200 = tpu.reciprocal %199 {approx = true} : vector<16x1xf32> -> vector<16x1xf32>
    %cst_67 = arith.constant dense<0.000000e+00> : vector<16x16xf32>
    %201 = tpu.matmul %197, %191, %cst_67 {dimension_numbers = #tpu.dot_dimension_numbers<[1], [0], [0], [1], [0, 0, 1, 1], [], []>} : vector<16x16xf32>, vector<16x16xf32>, vector<16x16xf32> -> vector<16x16xf32>
    %202 = vector.broadcast %200 : vector<16x1xf32> to vector<16x16xf32>
    %203 = arith.mulf %201, %202 : vector<16x16xf32>
    %c16_68 = arith.constant 16 : index
    %c48_69 = arith.constant 48 : index
    %204 = vector.load %arg6[%c16_68, %c48_69] : memref<32x128xf32, #tpu.memory_space<vmem>>, vector<16x16xf32>
    tpu.vector_store %arg6[%c16_68, %c48_69], %203 {strides = array<i32>} : memref<32x128xf32, #tpu.memory_space<vmem>>, vector<16x16xf32>,
    %205 = vector.extract_strided_slice %138 {offsets = [0, 64], sizes = [16, 16], strides = [1, 1]} : vector<16x128xf32> to vector<16x16xf32>
    %206 = vector.extract_strided_slice %139 {offsets = [0, 64], sizes = [16, 16], strides = [1, 1]} : vector<16x128xf32> to vector<16x16xf32>
    %207 = vector.extract_strided_slice %140 {offsets = [0, 64], sizes = [16, 16], strides = [1, 1]} : vector<16x128xf32> to vector<16x16xf32>
    %cst_70 = arith.constant dense<0.000000e+00> : vector<16x16xf32>
    %208 = tpu.matmul %205, %206, %cst_70 {dimension_numbers = #tpu.dot_dimension_numbers<[1], [1], [0], [0], [0, 0, 1, 0], [], []>} : vector<16x16xf32>, vector<16x16xf32>, vector<16x16xf32> -> vector<16x16xf32>
    %cst_71 = arith.constant dense<0xFF800000> : vector<16xf32>
    %209 = vector.multi_reduction <maximumf>, %208, %cst_71 [1] : vector<16x16xf32> to vector<16xf32>
    %210 = vector.shape_cast %209 : vector<16xf32> to vector<16x1xf32>
    %211 = vector.broadcast %210 : vector<16x1xf32> to vector<16x16xf32>
    %212 = arith.subf %208, %211 : vector<16x16xf32>
    %213 = math.exp %212 : vector<16x16xf32>
    %cst_72 = arith.constant dense<0.000000e+00> : vector<16xf32>
    %214 = vector.multi_reduction <add>, %213, %cst_72 [1] : vector<16x16xf32> to vector<16xf32>
    %215 = vector.shape_cast %214 : vector<16xf32> to vector<16x1xf32>
    %216 = tpu.reciprocal %215 {approx = true} : vector<16x1xf32> -> vector<16x1xf32>
    %cst_73 = arith.constant dense<0.000000e+00> : vector<16x16xf32>
    %217 = tpu.matmul %213, %207, %cst_73 {dimension_numbers = #tpu.dot_dimension_numbers<[1], [0], [0], [1], [0, 0, 1, 1], [], []>} : vector<16x16xf32>, vector<16x16xf32>, vector<16x16xf32> -> vector<16x16xf32>
    %218 = vector.broadcast %216 : vector<16x1xf32> to vector<16x16xf32>
    %219 = arith.mulf %217, %218 : vector<16x16xf32>
    %c16_74 = arith.constant 16 : index
    %c64_75 = arith.constant 64 : index
    %220 = vector.load %arg6[%c16_74, %c64_75] : memref<32x128xf32, #tpu.memory_space<vmem>>, vector<16x16xf32>
    tpu.vector_store %arg6[%c16_74, %c64_75], %219 {strides = array<i32>} : memref<32x128xf32, #tpu.memory_space<vmem>>, vector<16x16xf32>,
    %221 = vector.extract_strided_slice %138 {offsets = [0, 80], sizes = [16, 16], strides = [1, 1]} : vector<16x128xf32> to vector<16x16xf32>
    %222 = vector.extract_strided_slice %139 {offsets = [0, 80], sizes = [16, 16], strides = [1, 1]} : vector<16x128xf32> to vector<16x16xf32>
    %223 = vector.extract_strided_slice %140 {offsets = [0, 80], sizes = [16, 16], strides = [1, 1]} : vector<16x128xf32> to vector<16x16xf32>
    %cst_76 = arith.constant dense<0.000000e+00> : vector<16x16xf32>
    %224 = tpu.matmul %221, %222, %cst_76 {dimension_numbers = #tpu.dot_dimension_numbers<[1], [1], [0], [0], [0, 0, 1, 0], [], []>} : vector<16x16xf32>, vector<16x16xf32>, vector<16x16xf32> -> vector<16x16xf32>
    %cst_77 = arith.constant dense<0xFF800000> : vector<16xf32>
    %225 = vector.multi_reduction <maximumf>, %224, %cst_77 [1] : vector<16x16xf32> to vector<16xf32>
    %226 = vector.shape_cast %225 : vector<16xf32> to vector<16x1xf32>
    %227 = vector.broadcast %226 : vector<16x1xf32> to vector<16x16xf32>
    %228 = arith.subf %224, %227 : vector<16x16xf32>
    %229 = math.exp %228 : vector<16x16xf32>
    %cst_78 = arith.constant dense<0.000000e+00> : vector<16xf32>
    %230 = vector.multi_reduction <add>, %229, %cst_78 [1] : vector<16x16xf32> to vector<16xf32>
    %231 = vector.shape_cast %230 : vector<16xf32> to vector<16x1xf32>
    %232 = tpu.reciprocal %231 {approx = true} : vector<16x1xf32> -> vector<16x1xf32>
    %cst_79 = arith.constant dense<0.000000e+00> : vector<16x16xf32>
    %233 = tpu.matmul %229, %223, %cst_79 {dimension_numbers = #tpu.dot_dimension_numbers<[1], [0], [0], [1], [0, 0, 1, 1], [], []>} : vector<16x16xf32>, vector<16x16xf32>, vector<16x16xf32> -> vector<16x16xf32>
    %234 = vector.broadcast %232 : vector<16x1xf32> to vector<16x16xf32>
    %235 = arith.mulf %233, %234 : vector<16x16xf32>
    %c16_80 = arith.constant 16 : index
    %c80_81 = arith.constant 80 : index
    %236 = vector.load %arg6[%c16_80, %c80_81] : memref<32x128xf32, #tpu.memory_space<vmem>>, vector<16x16xf32>
    tpu.vector_store %arg6[%c16_80, %c80_81], %235 {strides = array<i32>} : memref<32x128xf32, #tpu.memory_space<vmem>>, vector<16x16xf32>,
    %237 = vector.extract_strided_slice %138 {offsets = [0, 96], sizes = [16, 16], strides = [1, 1]} : vector<16x128xf32> to vector<16x16xf32>
    %238 = vector.extract_strided_slice %139 {offsets = [0, 96], sizes = [16, 16], strides = [1, 1]} : vector<16x128xf32> to vector<16x16xf32>
    %239 = vector.extract_strided_slice %140 {offsets = [0, 96], sizes = [16, 16], strides = [1, 1]} : vector<16x128xf32> to vector<16x16xf32>
    %cst_82 = arith.constant dense<0.000000e+00> : vector<16x16xf32>
    %240 = tpu.matmul %237, %238, %cst_82 {dimension_numbers = #tpu.dot_dimension_numbers<[1], [1], [0], [0], [0, 0, 1, 0], [], []>} : vector<16x16xf32>, vector<16x16xf32>, vector<16x16xf32> -> vector<16x16xf32>
    %cst_83 = arith.constant dense<0xFF800000> : vector<16xf32>
    %241 = vector.multi_reduction <maximumf>, %240, %cst_83 [1] : vector<16x16xf32> to vector<16xf32>
    %242 = vector.shape_cast %241 : vector<16xf32> to vector<16x1xf32>
    %243 = vector.broadcast %242 : vector<16x1xf32> to vector<16x16xf32>
    %244 = arith.subf %240, %243 : vector<16x16xf32>
    %245 = math.exp %244 : vector<16x16xf32>
    %cst_84 = arith.constant dense<0.000000e+00> : vector<16xf32>
    %246 = vector.multi_reduction <add>, %245, %cst_84 [1] : vector<16x16xf32> to vector<16xf32>
    %247 = vector.shape_cast %246 : vector<16xf32> to vector<16x1xf32>
    %248 = tpu.reciprocal %247 {approx = true} : vector<16x1xf32> -> vector<16x1xf32>
    %cst_85 = arith.constant dense<0.000000e+00> : vector<16x16xf32>
    %249 = tpu.matmul %245, %239, %cst_85 {dimension_numbers = #tpu.dot_dimension_numbers<[1], [0], [0], [1], [0, 0, 1, 1], [], []>} : vector<16x16xf32>, vector<16x16xf32>, vector<16x16xf32> -> vector<16x16xf32>
    %250 = vector.broadcast %248 : vector<16x1xf32> to vector<16x16xf32>
    %251 = arith.mulf %249, %250 : vector<16x16xf32>
    %c16_86 = arith.constant 16 : index
    %c96_87 = arith.constant 96 : index
    %252 = vector.load %arg6[%c16_86, %c96_87] : memref<32x128xf32, #tpu.memory_space<vmem>>, vector<16x16xf32>
    tpu.vector_store %arg6[%c16_86, %c96_87], %251 {strides = array<i32>} : memref<32x128xf32, #tpu.memory_space<vmem>>, vector<16x16xf32>,
    %253 = vector.extract_strided_slice %138 {offsets = [0, 112], sizes = [16, 16], strides = [1, 1]} : vector<16x128xf32> to vector<16x16xf32>
    %254 = vector.extract_strided_slice %139 {offsets = [0, 112], sizes = [16, 16], strides = [1, 1]} : vector<16x128xf32> to vector<16x16xf32>
    %255 = vector.extract_strided_slice %140 {offsets = [0, 112], sizes = [16, 16], strides = [1, 1]} : vector<16x128xf32> to vector<16x16xf32>
    %cst_88 = arith.constant dense<0.000000e+00> : vector<16x16xf32>
    %256 = tpu.matmul %253, %254, %cst_88 {dimension_numbers = #tpu.dot_dimension_numbers<[1], [1], [0], [0], [0, 0, 1, 0], [], []>} : vector<16x16xf32>, vector<16x16xf32>, vector<16x16xf32> -> vector<16x16xf32>
    %cst_89 = arith.constant dense<0xFF800000> : vector<16xf32>
    %257 = vector.multi_reduction <maximumf>, %256, %cst_89 [1] : vector<16x16xf32> to vector<16xf32>
    %258 = vector.shape_cast %257 : vector<16xf32> to vector<16x1xf32>
    %259 = vector.broadcast %258 : vector<16x1xf32> to vector<16x16xf32>
    %260 = arith.subf %256, %259 : vector<16x16xf32>
    %261 = math.exp %260 : vector<16x16xf32>
    %cst_90 = arith.constant dense<0.000000e+00> : vector<16xf32>
    %262 = vector.multi_reduction <add>, %261, %cst_90 [1] : vector<16x16xf32> to vector<16xf32>
    %263 = vector.shape_cast %262 : vector<16xf32> to vector<16x1xf32>
    %264 = tpu.reciprocal %263 {approx = true} : vector<16x1xf32> -> vector<16x1xf32>
    %cst_91 = arith.constant dense<0.000000e+00> : vector<16x16xf32>
    %265 = tpu.matmul %261, %255, %cst_91 {dimension_numbers = #tpu.dot_dimension_numbers<[1], [0], [0], [1], [0, 0, 1, 1], [], []>} : vector<16x16xf32>, vector<16x16xf32>, vector<16x16xf32> -> vector<16x16xf32>
    %266 = vector.broadcast %264 : vector<16x1xf32> to vector<16x16xf32>
    %267 = arith.mulf %265, %266 : vector<16x16xf32>
    %c16_92 = arith.constant 16 : index
    %c112_93 = arith.constant 112 : index
    %268 = vector.load %arg6[%c16_92, %c112_93] : memref<32x128xf32, #tpu.memory_space<vmem>>, vector<16x16xf32>
    tpu.vector_store %arg6[%c16_92, %c112_93], %267 {strides = array<i32>} : memref<32x128xf32, #tpu.memory_space<vmem>>, vector<16x16xf32>,
    %c0_94 = arith.constant 0 : index
    %c0_95 = arith.constant 0 : index
    %269 = vector.load %arg6[%c0_94, %c0_95] : memref<32x128xf32, #tpu.memory_space<vmem>>, vector<32x128xf32>
    %c0_96 = arith.constant 0 : index
    %c0_97 = arith.constant 0 : index
    %270 = vector.load %arg3[%c0_96, %c0_97] : memref<128x128xf32, #tpu.memory_space<vmem>>, vector<128x128xf32>
    %cst_98 = arith.constant dense<0.000000e+00> : vector<32x128xf32>
    %271 = tpu.matmul %269, %270, %cst_98 {dimension_numbers = #tpu.dot_dimension_numbers<[1], [0], [0], [1], [0, 0, 1, 1], [], []>} : vector<32x128xf32>, vector<128x128xf32>, vector<32x128xf32> -> vector<32x128xf32>
    %c0_99 = arith.constant 0 : index
    %c0_100 = arith.constant 0 : index
    %272 = vector.load %arg4[%c0_99, %c0_100] : memref<1x128xf32, #tpu.memory_space<vmem>>, vector<1x128xf32>
    %273 = vector.broadcast %272 : vector<1x128xf32> to vector<32x128xf32>
    %274 = arith.addf %271, %273 : vector<32x128xf32>
    %c0_101 = arith.constant 0 : index
    %c0_102 = arith.constant 0 : index
    %275 = vector.load %arg5[%c0_101, %c0_102] : memref<32x128xf32, #tpu.memory_space<vmem>>, vector<32x128xf32>
    tpu.vector_store %arg5[%c0_101, %c0_102], %274 {strides = array<i32>} : memref<32x128xf32, #tpu.memory_space<vmem>>, vector<32x128xf32>,
    return
  }
  func.func @transform_0(%arg0: i32) -> (i32, i32) {
    %c0_i32 = arith.constant 0 : i32
    %c0_i32_0 = arith.constant 0 : i32
    return %arg0, %c0_i32 : i32, i32
  }
  func.func @transform_1(%arg0: i32) -> (i32, i32) {
    %c0_i32 = arith.constant 0 : i32
    %c0_i32_0 = arith.constant 0 : i32
    %c0_i32_1 = arith.constant 0 : i32
    return %c0_i32, %c0_i32_0 : i32, i32
  }
  func.func @transform_2(%arg0: i32) -> (i32, i32) {
    %c0_i32 = arith.constant 0 : i32
    %c0_i32_0 = arith.constant 0 : i32
    %c0_i32_1 = arith.constant 0 : i32
    return %c0_i32, %c0_i32_0 : i32, i32
  }
  func.func @transform_3(%arg0: i32) -> (i32, i32) {
    %c0_i32 = arith.constant 0 : i32
    %c0_i32_0 = arith.constant 0 : i32
    %c0_i32_1 = arith.constant 0 : i32
    return %c0_i32, %c0_i32_0 : i32, i32
  }
  func.func @transform_4(%arg0: i32) -> (i32, i32) {
    %c0_i32 = arith.constant 0 : i32
    %c0_i32_0 = arith.constant 0 : i32
    return %arg0, %c0_i32 : i32, i32
  }
}

</mosaic_0001>

<bundles_post_ra>
// kernel: tpu_custom_call.1
= control target key start
LH: loop header
LB: loop body
LE: loop exit
PB: predicated region body
PF: predicated region fallthrough
CT: control target
= control target key end

     0   :  { %9 = vsyncpa [#allocation4], 0  ;;  %s3174_s0 = inlined_call_operand.hbm [shape: f32[32,128], index: 0, kind: input, shape index: {}]   ;;  %s3175_s1 = inlined_call_operand.hbm [shape: f32[128,384], index: 1, kind: input, shape index: {}]   ;;  %s3176_s2 = inlined_call_operand.hbm [shape: f32[128,128], index: 2, kind: input, shape index: {}]   ;;  %s3177_s3 = inlined_call_operand.vmem [shape: f32[1,128], index: 3, kind: input, shape index: {}]   ;;  %s3178_s4 = inlined_call_operand.hbm [shape: f32[32,128], index: 4, kind: output, shape index: {}]  }
   0x1   :  { %10 = vsyncpa [#allocation7], 0  ;;  %s29_s17 = sshll.u32 %s3175_s1, 4  ;;  %s30_s17 = int_to_ptr.hbm [resolvable:$true] %s29_s17 }
   0x2   :  { %11 = vsyncpa [#allocation5], 0  ;;  %s2371_s18 = smov [#allocation6]   ;;  %s16_s22 = sshll.u32 %s3174_s0, 4  ;;  %s17_s22 = int_to_ptr.hbm [resolvable:$true] %s16_s22 }
   0x3   :  { %s31_s19 = sshll.u32 %s2371_s18, 4  ;;  %s2372_s23 = smov 384   ;;  %s32_s19 = int_to_ptr.vmem [resolvable:$true] %s31_s19 }
   0x4   :  { %s2373_s24 = smov 24   ;;  %s2374_s25 = smov [#allocation3]  }
   0x5   :  { %37 = dma.hbm_to_vmem [thread:$0]  %s30_s17, 6144, %s32_s19, [#allocation7], %s2372_s23, %s2372_s23, %s2373_s24  }
   0x6   :  { %s18_s26 = sshll.u32 %s2374_s25, 4  ;;  %s2375_s27 = smov 128   ;;  %s19_s26 = int_to_ptr.vmem [resolvable:$true] %s18_s26 }
   0x7   :  { %s2376_s28 = smov 8   ;;  %s42_s30 = sshll.u32 %s3176_s2, 4  ;;  %s43_s30 = int_to_ptr.hbm [resolvable:$true] %s42_s30 }
   0x8   :  { %24 = dma.hbm_to_vmem [thread:$0]  %s17_s22, 512, %s19_s26, [#allocation4], %s2375_s27, %s2375_s27, %s2376_s28  }
   0x9   :  { %s2377_s5 = smov [#allocation8]  }
   0xa   :  { %s44_s0 = sshll.u32 %s2377_s5, 4  ;;  %s45_s0 = int_to_ptr.vmem [resolvable:$true] %s44_s0 }
   0xb   :  { %50 = dma.hbm_to_vmem [thread:$0]  %s43_s30, 2048, %s45_s0, [#allocation7], %s2375_s27, %s2375_s27, %s2376_s28  }
   0xc   :  { %2365 = dma.done.wait [#allocation4], 512  }
   0xd   :  { %2366 = vsyncadd [#allocation4], 4294966784 }
   0xe   :  { %2367 = dma.done.wait [#allocation7], 8192  }
   0xf   :  { %2368 = vsyncadd [#allocation7], 4294959104  ;;  %v114_v0 = vld [vmem:[#allocation6 + $0x168] sm:$0xff]  ;;  %v111_v1 = vld [vmem:[#allocation6 + $0x150] sm:$0xff]  ;;  %s2378_s2 = smov 96   ;;  %vm206_vm0 = vcmask 130048  }
  0x10   :  { %117 = vmatpush.msra.mxu1 %v114_v0  ;;  %v108_v2 = vld [vmem:[#allocation6 + $0x138] sm:$0xff]  ;;  %v105_v3 = vld [vmem:[#allocation6 + $0x120] sm:$0xff]  ;;  %v102_v4 = vld [vmem:[#allocation6 + $0x108] sm:$0xff]  ;;  %s2379_s6 = smov 64   ;;  %s2380_s7 = smov 112   ;;  %vm401_vm1 = vcmask 261248  }
  0x11   :  { %v99_v5 = vld [vmem:[#allocation6 + $0xf0] sm:$0xff]  ;;  %v116_v6 = vld [vmem:[#allocation6 + $0x178] sm:$0xff]  ;;  %v113_v8 = vld [vmem:[#allocation6 + $0x160] sm:$0xff]  ;;  %s2381_s8 = smov 80   ;;  %s2382_s9 = smov 48   ;;  %vm508_vm2 = vcmask 392448  }
  0x12   :  { %118 = vmatpush.msra.mxu1 %v111_v1  ;;  %175 = vmatpush.msra.mxu2 %v116_v6  ;;  %v96_v7 = vld [vmem:[#allocation6 + $0xd8] sm:$0xff]  ;;  %v93_v9 = vld [vmem:[#allocation6 + $0xc0] sm:$0xff]  ;;  %v110_v10 = vld [vmem:[#allocation6 + $0x148] sm:$0xff]  ;;  %s2383_s10 = smov 16   ;;  %s2384_s11 = smov 32   ;;  %vm615_vm3 = vcmask 523648  }
  0x13   :  { %v90_v11 = vld [vmem:[#allocation6 + $0xa8] sm:$0xff]  ;;  %v107_v12 = vld [vmem:[#allocation6 + $0x130] sm:$0xff]  ;;  %v104_v14 = vld [vmem:[#allocation6 + $0x118] sm:$0xff]  ;;  %vm722_vm4 = vcmask 654848   ;;  %vm829_vm5 = vcmask 786048   ;;  %vm936_vm6 = vcmask 917248  }
  0x14   :  { %119 = vmatpush.msra.mxu1 %v108_v2  ;;  %176 = vmatpush.msra.mxu2 %v113_v8  ;;  %v87_v13 = vld [vmem:[#allocation6 + $0x90] sm:$0xff]  ;;  %v84_v15 = vld [vmem:[#allocation6 + $0x78] sm:$0xff]  ;;  %v101_v16 = vld [vmem:[#allocation6 + $0x100] sm:$0xff]  ;;  %vm1043_vm7 = vcmask 1048448   ;;  %s2385_s14 = smov [#allocation9]   ;;  %s1943_s18 = sshll.u32 %s3178_s4, 4  ;;  %s1944_s18 = int_to_ptr.hbm [resolvable:$true] %s1943_s18 }
  0x15   :  { %v81_v17 = vld [vmem:[#allocation6 + $0x60] sm:$0xff]  ;;  %v98_v18 = vld [vmem:[#allocation6 + $0xe8] sm:$0xff]  ;;  %v95_v20 = vld [vmem:[#allocation6 + $0xd0] sm:$0xff]  ;;  %s1941_s15 = sshll.u32 %s2385_s14, 4  ;;  %s1942_s15 = int_to_ptr.vmem [resolvable:$true] %s1941_s15 }
  0x16   :  { %120 = vmatpush.msra.mxu1 %v105_v3  ;;  %177 = vmatpush.msra.mxu2 %v110_v10  ;;  %v78_v19 = vld [vmem:[#allocation6 + $0x48] sm:$0xff]  ;;  %v75_v21 = vld [vmem:[#allocation6 + $0x30] sm:$0xff]  ;;  %v92_v22 = vld [vmem:[#allocation6 + $0xb8] sm:$0xff] }
  0x17   :  { %v72_v23 = vld [vmem:[#allocation6 + $0x18] sm:$0xff]  ;;  %v89_v24 = vld [vmem:[#allocation6 + $0xa0] sm:$0xff]  ;;  %v86_v26 = vld [vmem:[#allocation6 + $0x88] sm:$0xff] }
  0x18   :  { %121 = vmatpush.msra.mxu1 %v102_v4  ;;  %178 = vmatpush.msra.mxu2 %v107_v12  ;;  %v69_v25 = vld [vmem:[#allocation6] sm:$0xff]  ;;  %v115_v28 = vld [vmem:[#allocation6 + $0x170] sm:$0xff]  ;;  %v112_v30 = vld [vmem:[#allocation6 + $0x158] sm:$0xff] }
  0x19   :  { %v65_v27 = vld [vmem:[#allocation3] sm:$0xff]  ;;  %v83_v29 = vld [vmem:[#allocation6 + $0x70] sm:$0xff]  ;;  %v80_v31 = vld [vmem:[#allocation6 + $0x58] sm:$0xff] }
  0x1a   :  { %122 = vmatpush.msra.mxu1 %v99_v5  ;;  %179 = vmatpush.msra.mxu2 %v104_v14  ;;  %v77_v32 = vld [vmem:[#allocation6 + $0x40] sm:$0xff]  ;;  %v74_v34 = vld [vmem:[#allocation6 + $0x28] sm:$0xff]  ;;  %v71_v36 = vld [vmem:[#allocation6 + $0x10] sm:$0xff] }
  0x1b   :  { %v109_v33 = vld [vmem:[#allocation6 + $0x140] sm:$0xff]  ;;  %v106_v35 = vld [vmem:[#allocation6 + $0x128] sm:$0xff]  ;;  %v103_v38 = vld [vmem:[#allocation6 + $0x110] sm:$0xff] }
  0x1c   :  { %123 = vmatpush.msra.mxu1 %v96_v7  ;;  %180 = vmatpush.msra.mxu2 %v101_v16  ;;  %v66_v37 = vld [vmem:[#allocation3 + $0x8] sm:$0xff]  ;;  %v100_v39 = vld [vmem:[#allocation6 + $0xf8] sm:$0xff]  ;;  %v97_v40 = vld [vmem:[#allocation6 + $0xe0] sm:$0xff] }
  0x1d   :  { %v94_v41 = vld [vmem:[#allocation6 + $0xc8] sm:$0xff]  ;;  %v67_v42 = vld [vmem:[#allocation3 + $0x10] sm:$0xff]  ;;  %v88_v44 = vld [vmem:[#allocation6 + $0x98] sm:$0xff] }
  0x1e   :  { %124 = vmatpush.msra.mxu1 %v93_v9  ;;  %181 = vmatpush.msra.mxu2 %v98_v18  ;;  %v91_v43 = vld [vmem:[#allocation6 + $0xb0] sm:$0xff]  ;;  %v85_v45 = vld [vmem:[#allocation6 + $0x80] sm:$0xff]  ;;  %v82_v46 = vld [vmem:[#allocation6 + $0x68] sm:$0xff] }
  0x1f   :  { %v68_v47 = vld [vmem:[#allocation3 + $0x18] sm:$0xff]  ;;  %v79_v48 = vld [vmem:[#allocation6 + $0x50] sm:$0xff]  ;;  %v73_v50 = vld [vmem:[#allocation6 + $0x20] sm:$0xff] }
  0x20   :  { %125 = vmatpush.msra.mxu1 %v90_v11  ;;  %182 = vmatpush.msra.mxu2 %v95_v20  ;;  %v76_v49 = vld [vmem:[#allocation6 + $0x38] sm:$0xff]  ;;  %v70_v51 = vld [vmem:[#allocation6 + $0x8] sm:$0xff] }
  0x22   :  { %126 = vmatpush.msra.mxu1 %v87_v13  ;;  %183 = vmatpush.msra.mxu2 %v92_v22 }
  0x24   :  { %127 = vmatpush.msra.mxu1 %v84_v15  ;;  %184 = vmatpush.msra.mxu2 %v89_v24 }
  0x26   :  { %128 = vmatpush.msra.mxu1 %v81_v17  ;;  %185 = vmatpush.msra.mxu2 %v86_v26 }
  0x28   :  { %129 = vmatpush.msra.mxu1 %v78_v19  ;;  %186 = vmatpush.msra.mxu2 %v83_v29 }
  0x2a   :  { %130 = vmatpush.msra.mxu1 %v75_v21  ;;  %187 = vmatpush.msra.mxu2 %v80_v31 }
  0x2c   :  { %131 = vmatpush.msra.mxu1 %v72_v23  ;;  %188 = vmatpush.msra.mxu2 %v77_v32 }
  0x2e   :  { %132 = vmatpush.msra.mxu1 %v69_v25  ;;  %189 = vmatpush.msra.mxu2 %v74_v34 }
  0x2f   :  { %133 = vmatmul.f32.vlgmr.msra.gmra.mxu1 %v65_v27 }
  0x30   :  { %146 = vmatpush.msrb.mxu1 %v115_v28  ;;  %190 = vmatpush.msra.mxu2 %v71_v36 }
  0x31   :  { %191 = vmatmul.f32.vlgmr.msra.gmra.mxu2 %v65_v27 }
  0x32   :  { %147 = vmatpush.msrb.mxu1 %v112_v30 }
  0x34   :  { %148 = vmatpush.msrb.mxu1 %v109_v33 }
  0x36   :  { %149 = vmatpush.msrb.mxu1 %v106_v35 }
  0x37   :  { %136 = vmatmul.f32.gmra.mxu1 %v66_v37 }
  0x38   :  { %150 = vmatpush.msrb.mxu1 %v103_v38 }
  0x39   :  { %194 = vmatmul.f32.gmra.mxu2 %v66_v37 }
  0x3a   :  { %151 = vmatpush.msrb.mxu1 %v100_v39 }
  0x3c   :  { %152 = vmatpush.msrb.mxu1 %v97_v40 }
  0x3e   :  { %153 = vmatpush.msrb.mxu1 %v94_v41 }
  0x3f   :  { %139 = vmatmul.f32.gmra.mxu1 %v67_v42 }
  0x40   :  { %154 = vmatpush.msrb.mxu1 %v91_v43 }
  0x41   :  { %197 = vmatmul.f32.gmra.mxu2 %v67_v42 }
  0x42   :  { %155 = vmatpush.msrb.mxu1 %v88_v44 }
  0x44   :  { %156 = vmatpush.msrb.mxu1 %v85_v45 }
  0x46   :  { %157 = vmatpush.msrb.mxu1 %v82_v46 }
  0x47   :  { %142 = vmatmul.f32.gmra.mxu1 %v68_v47 }
  0x48   :  { %158 = vmatpush.msrb.mxu1 %v79_v48 }
  0x49   :  { %200 = vmatmul.f32.gmra.mxu2 %v68_v47 }
  0x4a   :  { %159 = vmatpush.msrb.mxu1 %v76_v49 }
  0x4c   :  { %160 = vmatpush.msrb.mxu1 %v73_v50 }
  0x4e   :  { %161 = vmatpush.msrb.mxu1 %v70_v51 }
  0x4f   :  { %162 = vmatmul.f32.vlgmr.msrb.gmra.mxu1 %v65_v27 }
  0x57   :  { %165 = vmatmul.f32.gmra.mxu1 %v66_v37 }
  0x5f   :  { %168 = vmatmul.f32.gmra.mxu1 %v67_v42 }
  0x67   :  { %171 = vmatmul.f32.gmra.mxu1 %v68_v47 }
  0xac   :  { %v134_v52 = vpop.f32.mrf.mxu1 }
  0xad   :  { %v2426_v53 = vmul.f32 0.25, %v134_v52 }
  0xaf   :  { %404 = vrot.lane.b32.xlu1 %v2426_v53, %s2378_s2 }
  0xb4   :  { %v137_v54 = vpop.f32.mrf.mxu1  ;;  %v2438_v59 = vpop.f32.mrf.mxu2 }
  0xb5   :  { %v2430_v55 = vmul.f32 0.25, %v137_v54 }
  0xb7   :  { %406 = vrot.lane.b32.xlu1 %v2430_v55, %s2378_s2 }
  0xbc   :  { %v2434_v56 = vpop.f32.mrf.mxu1  ;;  %v2450_v61 = vpop.f32.mrf.mxu2 }
  0xbd   :  { %v2462_v62 = vpack.i.bf16 %v2438_v59, %v2450_v61  ;;  %v2516_v14 = vmul.f32 0.25, %v2434_v56  ;;  %v2080_v33 = vpack.i.bf16 %v2450_v61, %v2438_v59 }
  0xc4   :  { %v143_v57 = vpop.f32.mrf.mxu1 }
  0xc5   :  { %v2511_v13 = vmul.f32 0.25, %v143_v57 }
  0xcc   :  { %v2436_v58 = vpop.f32.mrf.mxu1 }
  0xd4   :  { %v2440_v60 = vpop.f32.mrf.mxu1 }
  0xd5   :  { %624 = vrot.lane.b32.xlu1 %v2440_v60, %s2379_s6  ;;  %410 = vrot.lane.b32.xlu0 %v2440_v60, %s2378_s2 }
  0xd6   :  { %1957 = vmatpush.xpose.msk.msra.mxu3 %vm206_vm0, %v2440_v60 }
  0xda   :  { %1958 = vmatpush.xpose.msk.msra.mxu3 %vm206_vm0, %v2436_v58 }
  0xdc   :  { %v2501_v11 = vpop.f32.mrf.mxu1 }
  0xdd   :  { %1959 = vmatmul.msk.f32.vlgmr.msra.gmra.mxu3 %vm206_vm0, %v2426_v53  ;;  %620 = vrot.lane.b32.xlu1 %v2430_v55, %s2379_s6 }
  0xde   :  { %282 = vmatpush.msrb.mxu3 %v2450_v61  ;;  %408 = vrot.lane.b32.xlu0 %v2436_v58, %s2378_s2 }
  0xe0   :  { %283 = vmatpush.msrb.mxu3 %v2438_v59 }
  0xe4   :  { %v2507_v12 = vpop.f32.mrf.mxu1 }
  0xe5   :  { %1960 = vmatmul.msk.f32.gmra.mxu3 %vm206_vm0, %v2430_v55 }
  0xe6   :  { %2071 = vrot.lane.b32.xlu0 %v2462_v62, %s2378_s2 }
  0xee   :  { %618 = vrot.lane.b32.xlu0 %v2426_v53, %s2379_s6 }
 0x121   :  { %v405_v0 = vpop.permute.xlu1 %404 }
 0x129   :  { %v407_v2 = vpop.permute.xlu1 %406 }
 0x147   :  { %v411_v63 = vpop.permute.xlu0 %410  ;;  %v625_v6 = vpop.permute.xlu1 %624 }
 0x148   :  { %1969 = vmatpush.xpose.msk.msra.mxu0 %vm206_vm0, %v411_v63 }
 0x14f   :  { %v2538_v18 = vpop.permute.xlu1 %620 }
 0x150   :  { %v409_v1 = vpop.permute.xlu0 %408 }
 0x151   :  { %1970 = vmatpush.xpose.msk.msra.mxu0 %vm206_vm0, %v409_v1 }
 0x154   :  { %1971 = vmatmul.msk.f32.vlgmr.msra.gmra.mxu0 %vm206_vm0, %v405_v0 }
 0x158   :  { %v2072_v3 = vpop.permute.xlu0 %2071 }
 0x159   :  { %v2073_v4 = vunpack.i.l.bf16 %v2072_v3  ;;  %v2074_v5 = vunpack.i.h.bf16 %v2072_v3 }
 0x15b   :  { %489 = vmatpush.msrb.mxu0 %v2073_v4 }
 0x15c   :  { %1972 = vmatmul.msk.f32.gmra.mxu0 %vm206_vm0, %v407_v2 }
 0x15d   :  { %490 = vmatpush.msrb.mxu0 %v2074_v5 }
 0x15f   :  { %1981 = vmatpush.xpose.msk.msra.mxu0 %vm206_vm0, %v625_v6 }
 0x160   :  { %v236_v7 = vpop.f32.mrf.mxu3  ;;  %v2528_v15 = vpop.permute.xlu0 %618 }
 0x161   :  { %v242_v8 = vsel %vm206_vm0, %v236_v7, -inf }
 0x162   :  { %243 = vmax.xlane.f32.xlu0 %v242_v8 }
 0x168   :  { %v239_v9 = vpop.f32.mrf.mxu3 }
 0x169   :  { %v245_v10 = vsel %vm206_vm0, %v239_v9, -inf }
 0x16a   :  { %246 = vmax.xlane.f32.xlu1 %v245_v10 }
 0x176   :  { %299 = vrot.lane.b32.xlu0 %v2436_v58, %s2380_s7 }
 0x17e   :  { %513 = vrot.lane.b32.xlu0 %v2430_v55, %s2381_s8 }
 0x183   :  { %295 = vrot.lane.b32.xlu1 %v2426_v53, %s2380_s7 }
 0x186   :  { %731 = vrot.lane.b32.xlu0 %v2440_v60, %s2382_s9 }
 0x18b   :  { %301 = vrot.lane.b32.xlu1 %v2440_v60, %s2380_s7 }
 0x18e   :  { %725 = vrot.lane.b32.xlu0 %v2426_v53, %s2382_s9 }
 0x193   :  { %517 = vrot.lane.b32.xlu1 %v2440_v60, %s2381_s8 }
 0x196   :  { %943 = vrot.lane.b32.xlu0 %v2436_v58, %s2383_s10 }
 0x19b   :  { %515 = vrot.lane.b32.xlu1 %v2436_v58, %s2381_s8 }
 0x19e   :  { %838 = vrot.lane.b32.xlu0 %v2440_v60, %s2384_s11 }
 0x1a3   :  { %511 = vrot.lane.b32.xlu1 %v2426_v53, %s2381_s8 }
 0x1a6   :  { %941 = vrot.lane.b32.xlu0 %v2430_v55, %s2383_s10 }
 0x1ab   :  { %727 = vrot.lane.b32.xlu1 %v2430_v55, %s2382_s9 }
 0x1ae   :  { %1140 = vrot.lane.b32.xlu0 %v2501_v11, %s2380_s7 }
 0x1b3   :  { %1142 = vrot.lane.b32.xlu1 %v2507_v12, %s2380_s7 }
 0x1b6   :  { %1138 = vrot.lane.b32.xlu0 %v2511_v13, %s2380_s7 }
 0x1bb   :  { %1136 = vrot.lane.b32.xlu1 %v2516_v14, %s2380_s7 }
 0x1be   :  { %1350 = vrot.lane.b32.xlu0 %v2516_v14, %s2381_s8 }
 0x1c3   :  { %1356 = vrot.lane.b32.xlu1 %v2507_v12, %s2381_s8 }
 0x1c6   :  { %1352 = vrot.lane.b32.xlu0 %v2511_v13, %s2381_s8 }
 0x1cb   :  { %1250 = vrot.lane.b32.xlu1 %v2507_v12, %s2378_s2 }
 0x1ce   :  { %1566 = vrot.lane.b32.xlu0 %v2501_v11, %s2382_s9 }
 0x1d1   :  { %v2532_v16 = vpop.f32.mrf.mxu0 }
 0x1d2   :  { %v443_v17 = vsel %vm206_vm0, %v2532_v16, -inf }
 0x1d3   :  { %444 = vmax.xlane.f32.xlu2 %v443_v17  ;;  %1568 = vrot.lane.b32.xlu1 %v2507_v12, %s2382_s9 }
 0x1d5   :  { %v244_v19 = vpop.xlane.xlu0 %243 }
 0x1d6   :  { %v248_v20 = vsub.f32 %v236_v7, %v244_v19  ;;  %1462 = vrot.lane.b32.xlu0 %v2507_v12, %s2379_s6 }
 0x1d8   :  { %v250_v21 = vmul.f32 1.442695, %v248_v20 }
 0x1d9   :  { %v2542_v22 = vpop.f32.mrf.mxu0 }
 0x1da   :  { %2141 = vpow2.f32 %v250_v21  ;;  %v446_v23 = vsel %vm206_vm0, %v2542_v22, -inf }
 0x1db   :  { %447 = vmax.xlane.f32.xlu2 %v446_v23  ;;  %1562 = vrot.lane.b32.xlu1 %v2516_v14, %s2382_s9 }
 0x1dd   :  { %v247_v24 = vpop.xlane.xlu1 %246 }
 0x1de   :  { %v249_v25 = vsub.f32 %v239_v9, %v247_v24  ;;  %1780 = vrot.lane.b32.xlu0 %v2507_v12, %s2383_s10 }
 0x1e0   :  { %v2550_v26 = vpop.eup %2141  ;;  %v252_v27 = vmul.f32 1.442695, %v249_v25 }
 0x1e1   :  { %1961 = vmatmul.msk.f32.vlgmr.msrb.gmra.mxu3 %vm206_vm0, %v2550_v26 }
 0x1e2   :  { %2143 = vpow2.f32 %v252_v27 }
 0x1e3   :  { %1460 = vrot.lane.b32.xlu1 %v2501_v11, %s2379_s6 }
 0x1e6   :  { %1774 = vrot.lane.b32.xlu0 %v2516_v14, %s2383_s10 }
 0x1e8   :  { %v2558_v28 = vpop.eup %2143  ;;  %v300_v29 = vpop.permute.xlu0 %299 }
 0x1e9   :  { %1962 = vmatmul.msk.f32.gmra.mxu3 %vm206_vm0, %v2558_v28 }
 0x1eb   :  { %1456 = vrot.lane.b32.xlu1 %v2516_v14, %s2379_s6 }
 0x1ee   :  { %1672 = vrot.lane.b32.xlu0 %v2501_v11, %s2384_s11 }
 0x1f0   :  { %v514_v30 = vpop.permute.xlu0 %513 }
 0x1f3   :  { %622 = vrot.lane.b32.xlu2 %v2436_v58, %s2379_s6  ;;  %1458 = vrot.lane.b32.xlu1 %v2511_v13, %s2379_s6 }
 0x1f5   :  { %v296_v31 = vpop.permute.xlu1 %295 }
 0x1f6   :  { %1670 = vrot.lane.b32.xlu0 %v2511_v13, %s2384_s11 }
 0x1f8   :  { %v2572_v32 = vpop.permute.xlu0 %731 }
 0x1fb   :  { %297 = vrot.lane.b32.xlu2 %v2430_v55, %s2380_s7  ;;  %1776 = vrot.lane.b32.xlu1 %v2511_v13, %s2383_s10 }
 0x1fd   :  { %v302_v34 = vpop.permute.xlu1 %301 }
 0x1fe   :  { %1963 = vmatpush.xpose.msk.msra.mxu3 %vm206_vm0, %v302_v34  ;;  %2081 = vrot.lane.b32.xlu0 %v2080_v33, %s2380_s7 }
 0x200   :  { %v2582_v35 = vpop.permute.xlu0 %725 }
 0x202   :  { %1964 = vmatpush.xpose.msk.msra.mxu3 %vm206_vm0, %v300_v29 }
 0x203   :  { %2076 = vrot.lane.b32.xlu2 %v2462_v62, %s2379_s6  ;;  %2091 = vrot.lane.b32.xlu1 %v2462_v62, %s2382_s9 }
 0x205   :  { %1965 = vmatmul.msk.f32.vlgmr.msra.gmra.mxu3 %vm206_vm0, %v296_v31  ;;  %v518_v36 = vpop.permute.xlu1 %517 }
 0x206   :  { %1975 = vmatpush.xpose.msk.msrb.mxu2 %vm206_vm0, %v518_v36 }
 0x208   :  { %v2591_v37 = vpop.permute.xlu0 %943 }
 0x20b   :  { %729 = vrot.lane.b32.xlu2 %v2436_v58, %s2382_s9 }
 0x20d   :  { %v516_v38 = vpop.permute.xlu1 %515 }
 0x20e   :  { %1976 = vmatpush.xpose.msk.msrb.mxu2 %vm206_vm0, %v516_v38 }
 0x210   :  { %v839_v39 = vpop.permute.xlu0 %838 }
 0x213   :  { %945 = vrot.lane.b32.xlu2 %v2440_v60, %s2383_s10 }
 0x215   :  { %v512_v40 = vpop.permute.xlu1 %511 }
 0x216   :  { %1977 = vmatmul.msk.f32.vlgmr.msrb.gmra.mxu2 %vm206_vm0, %v512_v40 }
 0x218   :  { %v2599_v41 = vpop.permute.xlu0 %941 }
 0x21b   :  { %939 = vrot.lane.b32.xlu2 %v2426_v53, %s2383_s10 }
 0x21d   :  { %v2655_v61 = vpop.permute.xlu1 %727 }
 0x21e   :  { %1978 = vmatmul.msk.f32.gmra.mxu2 %vm206_vm0, %v514_v30  ;;  %v257_v30 = vsel %vm206_vm0, %v2558_v28, 0.0 }
 0x220   :  { %v2604_v42 = vpop.permute.xlu0 %1140 }
 0x223   :  { %836 = vrot.lane.b32.xlu2 %v2436_v58, %s2384_s11 }
 0x225   :  { %v2665_v4 = vpop.permute.xlu1 %1142 }
 0x228   :  { %v2608_v43 = vpop.permute.xlu0 %1138 }
 0x22b   :  { %832 = vrot.lane.b32.xlu2 %v2426_v53, %s2384_s11 }
 0x22d   :  { %v2672_v9 = vpop.permute.xlu1 %1136 }
 0x230   :  { %v2612_v44 = vpop.permute.xlu0 %1350 }
 0x233   :  { %834 = vrot.lane.b32.xlu2 %v2430_v55, %s2384_s11 }
 0x238   :  { %v2616_v45 = vpop.permute.xlu0 %1352 }
 0x23b   :  { %1354 = vrot.lane.b32.xlu2 %v2501_v11, %s2381_s8 }
 0x240   :  { %v2620_v46 = vpop.permute.xlu0 %1566 }
 0x243   :  { %1248 = vrot.lane.b32.xlu2 %v2501_v11, %s2378_s2 }
 0x246   :  { %v445_v47 = vpop.xlane.xlu2 %444 }
 0x247   :  { %v449_v48 = vsub.f32 %v2532_v16, %v445_v47  ;;  %v2680_v16 = vpop.f32.mrf.mxu2 }
 0x248   :  { %v2625_v49 = vpop.permute.xlu0 %1462 }
 0x249   :  { %v451_v50 = vmul.f32 1.442695, %v449_v48 }
 0x24b   :  { %2145 = vpow2.f32 %v451_v50  ;;  %1244 = vrot.lane.b32.xlu2 %v2516_v14, %s2378_s2 }
 0x24e   :  { %v448_v51 = vpop.xlane.xlu2 %447 }
 0x24f   :  { %v450_v52 = vsub.f32 %v2542_v22, %v448_v51  ;;  %v2688_v20 = vpop.f32.mrf.mxu2 }
 0x250   :  { %v2630_v53 = vpop.permute.xlu0 %1780 }
 0x251   :  { %v2632_v54 = vpop.eup %2145  ;;  %v453_v55 = vmul.f32 1.442695, %v450_v52 }
 0x252   :  { %1973 = vmatmul.msk.f32.vlgmr.msrb.gmra.mxu0 %vm206_vm0, %v2632_v54 }
 0x253   :  { %2147 = vpow2.f32 %v453_v55  ;;  %1246 = vrot.lane.b32.xlu2 %v2511_v13, %s2378_s2 }
 0x256   :  { %v623_v56 = vpop.permute.xlu2 %622 }
 0x257   :  { %1982 = vmatpush.xpose.msk.msra.mxu0 %vm206_vm0, %v623_v56 }
 0x258   :  { %v2640_v57 = vpop.permute.xlu0 %1774 }
 0x259   :  { %v2642_v58 = vpop.eup %2147 }
 0x25a   :  { %1974 = vmatmul.msk.f32.gmra.mxu0 %vm206_vm0, %v2642_v58 }
 0x25b   :  { %1993 = vmatpush.xpose.msk.msrb.mxu0 %vm206_vm0, %v839_v39  ;;  %1564 = vrot.lane.b32.xlu2 %v2511_v13, %s2382_s9 }
 0x25e   :  { %v298_v59 = vpop.permute.xlu2 %297 }
 0x25f   :  { %1966 = vmatmul.msk.f32.gmra.mxu3 %vm206_vm0, %v298_v59 }
 0x260   :  { %v2649_v60 = vpop.permute.xlu0 %1672 }
 0x262   :  { %1983 = vmatmul.msk.f32.vlgmr.msra.gmra.mxu0 %vm206_vm0, %v2528_v15  ;;  %v2678_v15 = vpop.permute.xlu1 %1356 }
 0x263   :  { %1778 = vrot.lane.b32.xlu2 %v2501_v11, %s2383_s10 }
 0x264   :  { %v2691_v21 = vpop.f32.mrf.mxu3 }
 0x266   :  { %v2077_v63 = vpop.permute.xlu2 %2076 }
 0x267   :  { %v2078_v0 = vunpack.i.l.bf16 %v2077_v63  ;;  %v2079_v2 = vunpack.i.h.bf16 %v2077_v63 }
 0x268   :  { %v2657_v1 = vpop.permute.xlu0 %1670 }
 0x269   :  { %703 = vmatpush.msra.mxu1 %v2078_v0  ;;  %2053 = vmatpush.msra.mxu2 %v2078_v0 }
 0x26a   :  { %1984 = vmatmul.msk.f32.gmra.mxu0 %vm206_vm0, %v2538_v18  ;;  %v1251_v18 = vpop.permute.xlu1 %1250 }
 0x26b   :  { %704 = vmatpush.msra.mxu1 %v2079_v2  ;;  %2054 = vmatpush.msra.mxu2 %v2079_v2 }
 0x26c   :  { %1674 = vrot.lane.b32.xlu2 %v2507_v12, %s2384_s11  ;;  %v2702_v25 = vpop.f32.mrf.mxu3 }
 0x26d   :  { %1987 = vmatpush.xpose.msk.msrb.mxu2 %vm206_vm0, %v2572_v32  ;;  %v254_v32 = vsel %vm206_vm0, %v2550_v26, 0.0 }
 0x26e   :  { %v730_v3 = vpop.permute.xlu2 %729 }
 0x270   :  { %v2082_v5 = vpop.permute.xlu0 %2081 }
 0x271   :  { %1988 = vmatpush.xpose.msk.msrb.mxu2 %vm206_vm0, %v730_v3  ;;  %v2084_v6 = vunpack.i.h.bf16 %v2082_v5  ;;  %v2083_v7 = vunpack.i.l.bf16 %v2082_v5 }
 0x272   :  { %v2694_v23 = vpop.permute.xlu1 %1568 }
 0x273   :  { %382 = vmatpush.msrb.mxu3 %v2084_v6 }
 0x274   :  { %1668 = vrot.lane.b32.xlu2 %v2516_v14, %s2384_s11 }
 0x275   :  { %383 = vmatpush.msrb.mxu3 %v2083_v7 }
 0x276   :  { %v2670_v8 = vpop.permute.xlu2 %945 }
 0x27a   :  { %v2708_v29 = vpop.permute.xlu1 %1562 }
 0x27c   :  { %2086 = vrot.lane.b32.xlu2 %v2462_v62, %s2381_s8 }
 0x27e   :  { %v2676_v10 = vpop.permute.xlu2 %939 }
 0x282   :  { %v1461_v28 = vpop.permute.xlu1 %1460 }
 0x286   :  { %v837_v17 = vpop.permute.xlu2 %836 }
 0x287   :  { %1994 = vmatpush.xpose.msk.msrb.mxu0 %vm206_vm0, %v837_v17 }
 0x288   :  { %v2716_v34 = vpop.f32.mrf.mxu3 }
 0x28a   :  { %v1457_v38 = vpop.permute.xlu1 %1456 }
 0x28b   :  { %2005 = vmatpush.xpose.msk.msra.mxu0 %vm206_vm0, %v2507_v12 }
 0x28e   :  { %v833_v19 = vpop.permute.xlu2 %832 }
 0x28f   :  { %2006 = vmatpush.xpose.msk.msra.mxu0 %vm206_vm0, %v2501_v11 }
 0x290   :  { %1995 = vmatmul.msk.f32.vlgmr.msrb.gmra.mxu0 %vm206_vm0, %v833_v19 }
 0x292   :  { %v1459_v39 = vpop.permute.xlu1 %1458 }
 0x293   :  { %2017 = vmatpush.xpose.msk.msrb.mxu0 %vm206_vm0, %v1251_v18 }
 0x296   :  { %v835_v22 = vpop.permute.xlu2 %834 }
 0x298   :  { %1996 = vmatmul.msk.f32.gmra.mxu0 %vm206_vm0, %v835_v22 }
 0x299   :  { %v2696_v24 = vpop.f32.mrf.mxu2 }
 0x29a   :  { %v550_v11 = vsel %vm206_vm0, %v2696_v24, -inf  ;;  %v2774_v18 = vpop.permute.xlu1 %1776 }
 0x29b   :  { %551 = vmax.xlane.f32.xlu0 %v550_v11 }
 0x29e   :  { %v2700_v12 = vpop.permute.xlu2 %1354 }
 0x2a0   :  { %2007 = vmatmul.msk.f32.vlgmr.msra.gmra.mxu0 %vm206_vm0, %v2516_v14  ;;  %v334_v14 = vsel %vm206_vm0, %v2716_v34, -inf }
 0x2a1   :  { %v2706_v27 = vpop.f32.mrf.mxu2 }
 0x2a2   :  { %v553_v31 = vsel %vm206_vm0, %v2706_v27, -inf }
 0x2a3   :  { %258 = vadd.xlane.f32.xlu0 %v257_v30  ;;  %554 = vmax.xlane.f32.xlu1 %v553_v31 }
 0x2a5   :  { %255 = vadd.xlane.f32.xlu2 %v254_v32 }
 0x2a6   :  { %v1249_v33 = vpop.permute.xlu2 %1248 }
 0x2a7   :  { %2018 = vmatpush.xpose.msk.msrb.mxu0 %vm206_vm0, %v1249_v33 }
 0x2a8   :  { %2008 = vmatmul.msk.f32.gmra.mxu0 %vm206_vm0, %v2511_v13 }
 0x2ab   :  { %2029 = vmatpush.xpose.msk.msra.mxu0 %vm206_vm0, %v2625_v49  ;;  %335 = vmax.xlane.f32.xlu0 %v334_v14 }
 0x2ae   :  { %v1245_v26 = vpop.permute.xlu2 %1244 }
 0x2af   :  { %2030 = vmatpush.xpose.msk.msra.mxu0 %vm206_vm0, %v1461_v28  ;;  %v2092_v28 = vpop.permute.xlu1 %2091 }
 0x2b0   :  { %2019 = vmatmul.msk.f32.vlgmr.msrb.gmra.mxu0 %vm206_vm0, %v1245_v26 }
 0x2b6   :  { %v1247_v36 = vpop.permute.xlu2 %1246 }
 0x2b8   :  { %2020 = vmatmul.msk.f32.gmra.mxu0 %vm206_vm0, %v1247_v36  ;;  %v2093_v36 = vunpack.i.l.bf16 %v2092_v28 }
 0x2be   :  { %v2728_v13 = vpop.permute.xlu2 %1564 }
 0x2c0   :  { %2031 = vmatmul.msk.f32.vlgmr.msra.gmra.mxu0 %vm206_vm0, %v1457_v38 }
 0x2c6   :  { %v2731_v40 = vpop.permute.xlu2 %1778 }
 0x2c8   :  { %2032 = vmatmul.msk.f32.gmra.mxu0 %vm206_vm0, %v1459_v39 }
 0x2ce   :  { %v1675_v47 = vpop.permute.xlu2 %1674 }
 0x2cf   :  { %v2734_v48 = vpop.f32.mrf.mxu0  ;;  %2041 = vmatpush.xpose.msk.msrb.mxu0 %vm206_vm0, %v1675_v47 }
 0x2d3   :  { %2042 = vmatpush.xpose.msk.msrb.mxu0 %vm206_vm0, %v2649_v60 }
 0x2d6   :  { %v1669_v49 = vpop.permute.xlu2 %1668 }
 0x2d7   :  { %v2739_v50 = vpop.f32.mrf.mxu0  ;;  %2043 = vmatmul.msk.f32.vlgmr.msrb.gmra.mxu0 %vm206_vm0, %v1669_v49 }
 0x2de   :  { %v2087_v51 = vpop.permute.xlu2 %2086 }
 0x2df   :  { %v2088_v52 = vunpack.i.l.bf16 %v2087_v51  ;;  %v2742_v55 = vpop.f32.mrf.mxu0  ;;  %2044 = vmatmul.msk.f32.gmra.mxu0 %vm206_vm0, %v2657_v1  ;;  %v2089_v59 = vunpack.i.h.bf16 %v2087_v51  ;;  %v2758_v1 = vpack.i.bf16 %v2680_v16, %v2688_v20 }
 0x2e0   :  { %v657_v56 = vsel %vm206_vm0, %v2742_v55, -inf }
 0x2e1   :  { %658 = vmax.xlane.f32.xlu0 %v657_v56  ;;  %596 = vmatpush.msra.mxu3 %v2088_v52 }
 0x2e2   :  { %v2748_v63 = vpop.f32.mrf.mxu3 }
 0x2e3   :  { %597 = vmatpush.msra.mxu3 %v2089_v59  ;;  %v337_v60 = vsel %vm206_vm0, %v2748_v63, -inf }
 0x2e4   :  { %338 = vmax.xlane.f32.xlu2 %v337_v60 }
 0x2e7   :  { %v2752_v0 = vpop.f32.mrf.mxu0 }
 0x2e8   :  { %v660_v2 = vsel %vm206_vm0, %v2752_v0, -inf }
 0x2e9   :  { %661 = vmax.xlane.f32.xlu1 %v660_v2 }
 0x2f5   :  { %2111 = vrot.lane.b32.xlu0 %v2758_v1, %s2381_s8 }
 0x2fc   :  { %2106 = vrot.lane.b32.xlu2 %v2758_v1, %s2380_s7 }
 0x302   :  { %2096 = vrot.lane.b32.xlu1 %v2462_v62, %s2383_s10 }
 0x30a   :  { %2101 = vrot.lane.b32.xlu1 %v2462_v62, %s2384_s11 }
 0x30d   :  { %v2768_v3 = vpop.f32.mrf.mxu0 }
 0x30e   :  { %v552_v5 = vpop.xlane.xlu0 %551  ;;  %v871_v62 = vsel %vm206_vm0, %v2768_v3, -inf }
 0x312   :  { %2116 = vrot.lane.b32.xlu1 %v2758_v1, %s2378_s2 }
 0x315   :  { %v2772_v6 = vpop.f32.mrf.mxu0 }
 0x316   :  { %v259_v7 = vpop.xlane.xlu0 %258  ;;  %v555_v2 = vpop.xlane.xlu1 %554 }
 0x317   :  { %2149 = vrcp.f32 %v259_v7 }
 0x318   :  { %v256_v17 = vpop.xlane.xlu2 %255 }
 0x319   :  { %2151 = vrcp.f32 %v256_v17 }
 0x31d   :  { %v2150_v19 = vpop.eup %2149  ;;  %v2779_v31 = vpop.f32.mrf.mxu0 }
 0x31e   :  { %v292_v22 = vmul.f32 %v2150_v19, %v2702_v25  ;;  %v336_v11 = vpop.xlane.xlu0 %335  ;;  %v874_v25 = vsel %vm206_vm0, %v2772_v6, -inf  ;;  %v1083_v51 = vsel %vm206_vm0, %v2779_v31, -inf }
 0x31f   :  { %v2152_v30 = vpop.eup %2151  ;;  %v340_v32 = vsub.f32 %v2716_v34, %v336_v11  ;;  %872 = vmax.xlane.f32.xlu0 %v871_v62  ;;  %v2094_v34 = vunpack.i.h.bf16 %v2092_v28 }
 0x320   :  { %294 = vst.msk [vmem:[#allocation2 + $0x8] sm:$0xff] %vm206_vm0, %v292_v22  ;;  %v291_v33 = vmul.f32 %v2152_v30, %v2691_v21  ;;  %v556_v30 = vsub.f32 %v2696_v24, %v552_v5  ;;  %v557_v24 = vsub.f32 %v2706_v27, %v555_v2 }
 0x321   :  { %v342_v14 = vmul.f32 1.442695, %v340_v32 }
 0x322   :  { %293 = vst.msk [vmem:[#allocation2] sm:$0xff] %vm206_vm0, %v291_v33 }
 0x323   :  { %2153 = vpow2.f32 %v342_v14 }
 0x325   :  { %v2787_v38 = vpop.f32.mrf.mxu0 }
 0x326   :  { %v1086_v21 = vsel %vm206_vm0, %v2787_v38, -inf }
 0x327   :  { %875 = vmax.xlane.f32.xlu0 %v874_v25  ;;  %v558_v25 = vmul.f32 1.442695, %v556_v30 }
 0x329   :  { %v2154_v26 = vpop.eup %2153 }
 0x32a   :  { %1967 = vmatmul.msk.f32.vlgmr.msrb.gmra.mxu3 %vm206_vm0, %v2154_v26  ;;  %v346_v49 = vsel %vm206_vm0, %v2154_v26, 0.0 }
 0x32b   :  { %810 = vmatpush.msrb.mxu3 %v2093_v36 }
 0x32d   :  { %811 = vmatpush.msrb.mxu3 %v2094_v34  ;;  %v2792_v39 = vpop.f32.mrf.mxu0 }
 0x32e   :  { %v1283_v47 = vsel %vm206_vm0, %v2792_v39, -inf }
 0x32f   :  { %1087 = vmax.xlane.f32.xlu0 %v1086_v21 }
 0x335   :  { %v2799_v52 = vpop.f32.mrf.mxu0 }
 0x336   :  { %v1286_v56 = vsel %vm206_vm0, %v2799_v52, -inf }
 0x337   :  { %1284 = vmax.xlane.f32.xlu0 %v1283_v47 }
 0x33c   :  { %347 = vadd.xlane.f32.xlu1 %v346_v49 }
 0x33d   :  { %v2803_v59 = vpop.f32.mrf.mxu0 }
 0x33e   :  { %v1495_v60 = vsel %vm206_vm0, %v2803_v59, -inf }
 0x344   :  { %1084 = vmax.xlane.f32.xlu1 %v1083_v51 }
 0x34c   :  { %1287 = vmax.xlane.f32.xlu1 %v1286_v56 }
 0x354   :  { %v659_v7 = vpop.xlane.xlu0 %658  ;;  %1496 = vmax.xlane.f32.xlu1 %v1495_v60 }
 0x355   :  { %v663_v17 = vsub.f32 %v2742_v55, %v659_v7 }
 0x357   :  { %v665_v19 = vmul.f32 1.442695, %v663_v17  ;;  %v339_v22 = vpop.xlane.xlu2 %338 }
 0x358   :  { %v341_v11 = vsub.f32 %v2748_v63, %v339_v22 }
 0x359   :  { %2155 = vpow2.f32 %v665_v19 }
 0x35a   :  { %v344_v62 = vmul.f32 1.442695, %v341_v11 }
 0x35c   :  { %2157 = vpow2.f32 %v344_v62  ;;  %v662_v32 = vpop.xlane.xlu1 %661 }
 0x35d   :  { %v664_v33 = vsub.f32 %v2752_v0, %v662_v32  ;;  %v560_v0 = vmul.f32 1.442695, %v557_v24 }
 0x35f   :  { %v2811_v14 = vpop.eup %2155  ;;  %v667_v28 = vmul.f32 1.442695, %v664_v33 }
 0x360   :  { %1985 = vmatmul.msk.f32.vlgmr.msra.gmra.mxu1 %vm206_vm0, %v2811_v14 }
 0x361   :  { %2159 = vpow2.f32 %v667_v28  ;;  %v455_v28 = vsel %vm206_vm0, %v2632_v54, 0.0  ;;  %v458_v54 = vsel %vm206_vm0, %v2642_v58, 0.0 }
 0x362   :  { %v2158_v55 = vpop.eup %2157  ;;  %2161 = vpow2.f32 %v558_v25  ;;  %v669_v25 = vsel %vm206_vm0, %v2811_v14, 0.0 }
 0x363   :  { %1968 = vmatmul.msk.f32.gmra.mxu3 %vm206_vm0, %v2158_v55  ;;  %v349_v63 = vsel %vm206_vm0, %v2158_v55, 0.0  ;;  %2163 = vpow2.f32 %v560_v0 }
 0x364   :  { %350 = vadd.xlane.f32.xlu2 %v349_v63 }
 0x367   :  { %v2818_v5 = vpop.eup %2159 }
 0x368   :  { %1986 = vmatmul.msk.f32.vlgmr.msra.gmra.mxu2 %vm206_vm0, %v2818_v5  ;;  %v2824_v26 = vpop.eup %2161  ;;  %v672_v14 = vsel %vm206_vm0, %v2818_v5, 0.0 }
 0x369   :  { %1999 = vmatpush.xpose.msk.msra.mxu2 %vm206_vm0, %v2670_v8  ;;  %v2834_v27 = vpop.eup %2163  ;;  %v562_v5 = vsel %vm206_vm0, %v2824_v26, 0.0 }
 0x36a   :  { %v565_v0 = vsel %vm206_vm0, %v2834_v27, 0.0 }
 0x36b   :  { %1979 = vmatmul.msk.f32.vlgmr.msra.gmra.mxu3 %vm206_vm0, %v2824_v26 }
 0x36d   :  { %2000 = vmatpush.xpose.msk.msra.mxu2 %vm206_vm0, %v2591_v37 }
 0x370   :  { %1989 = vmatmul.msk.f32.vlgmr.msrb.gmra.mxu2 %vm206_vm0, %v2582_v35 }
 0x371   :  { %2011 = vmatpush.xpose.msk.msrb.mxu2 %vm206_vm0, %v2665_v4 }
 0x373   :  { %1980 = vmatmul.msk.f32.gmra.mxu3 %vm206_vm0, %v2834_v27 }
 0x374   :  { %v2097_v8 = vpop.permute.xlu1 %2096 }
 0x375   :  { %2012 = vmatpush.xpose.msk.msrb.mxu2 %vm206_vm0, %v2604_v42  ;;  %v2098_v36 = vunpack.i.l.bf16 %v2097_v8  ;;  %v2099_v34 = vunpack.i.h.bf16 %v2097_v8  ;;  %v2852_v42 = vpop.permute.xlu0 %2111 }
 0x377   :  { %1024 = vmatpush.msra.mxu3 %v2098_v36 }
 0x378   :  { %1990 = vmatmul.msk.f32.gmra.mxu2 %vm206_vm0, %v2655_v61 }
 0x379   :  { %1025 = vmatpush.msra.mxu3 %v2099_v34 }
 0x37c   :  { %v2102_v35 = vpop.permute.xlu1 %2101 }
 0x37d   :  { %v2103_v37 = vunpack.i.l.bf16 %v2102_v35  ;;  %v2104_v21 = vunpack.i.h.bf16 %v2102_v35 }
 0x37f   :  { %917 = vmatpush.msrb.mxu1 %v2103_v37 }
 0x380   :  { %2001 = vmatmul.msk.f32.vlgmr.msra.gmra.mxu2 %vm206_vm0, %v2676_v10 }
 0x381   :  { %2023 = vmatpush.xpose.msk.msra.mxu2 %vm206_vm0, %v2678_v15  ;;  %918 = vmatpush.msrb.mxu1 %v2104_v21 }
 0x383   :  { %1123 = vmatpush.msra.mxu1 %v2688_v20 }
 0x385   :  { %1124 = vmatpush.msra.mxu1 %v2680_v16  ;;  %2024 = vmatpush.xpose.msk.msra.mxu2 %vm206_vm0, %v2700_v12 }
 0x388   :  { %2002 = vmatmul.msk.f32.gmra.mxu2 %vm206_vm0, %v2599_v41  ;;  %v2117_v41 = vpop.permute.xlu1 %2116 }
 0x390   :  { %2013 = vmatmul.msk.f32.vlgmr.msrb.gmra.mxu2 %vm206_vm0, %v2672_v9  ;;  %v2118_v9 = vunpack.i.l.bf16 %v2117_v41 }
 0x391   :  { %2035 = vmatpush.xpose.msk.msrb.mxu2 %vm206_vm0, %v2694_v23  ;;  %v2119_v23 = vunpack.i.h.bf16 %v2117_v41 }
 0x392   :  { %v873_v61 = vpop.xlane.xlu0 %872 }
 0x393   :  { %v877_v4 = vsub.f32 %v2768_v3, %v873_v61 }
 0x395   :  { %v879_v10 = vmul.f32 1.442695, %v877_v4  ;;  %2036 = vmatpush.xpose.msk.msrb.mxu2 %vm206_vm0, %v2620_v46 }
 0x397   :  { %2165 = vpow2.f32 %v879_v10 }
 0x398   :  { %2014 = vmatmul.msk.f32.gmra.mxu2 %vm206_vm0, %v2608_v43 }
 0x39a   :  { %v876_v15 = vpop.xlane.xlu0 %875 }
 0x39b   :  { %v878_v16 = vsub.f32 %v2772_v6, %v876_v15 }
 0x39d   :  { %v2864_v20 = vpop.eup %2165  ;;  %v881_v12 = vmul.f32 1.442695, %v878_v16 }
 0x39e   :  { %1997 = vmatmul.msk.f32.vlgmr.msrb.gmra.mxu1 %vm206_vm0, %v2864_v20  ;;  %v883_v55 = vsel %vm206_vm0, %v2864_v20, 0.0 }
 0x39f   :  { %2167 = vpow2.f32 %v881_v12  ;;  %1329 = vmatpush.msrb.mxu1 %v2118_v9 }
 0x3a0   :  { %2025 = vmatmul.msk.f32.vlgmr.msra.gmra.mxu2 %vm206_vm0, %v2612_v44 }
 0x3a1   :  { %1330 = vmatpush.msrb.mxu1 %v2119_v23  ;;  %2047 = vmatpush.xpose.msk.msra.mxu2 %vm206_vm0, %v2630_v53 }
 0x3a2   :  { %v1088_v44 = vpop.xlane.xlu0 %1087 }
 0x3a5   :  { %v2872_v43 = vpop.eup %2167  ;;  %2048 = vmatpush.xpose.msk.msra.mxu2 %vm206_vm0, %v2731_v40  ;;  %v1090_v40 = vsub.f32 %v2787_v38, %v1088_v44 }
 0x3a6   :  { %1998 = vmatmul.msk.f32.gmra.mxu1 %vm206_vm0, %v2872_v43  ;;  %v886_v63 = vsel %vm206_vm0, %v2872_v43, 0.0 }
 0x3a7   :  { %v1093_v47 = vmul.f32 1.442695, %v1090_v40 }
 0x3a8   :  { %2026 = vmatmul.msk.f32.gmra.mxu2 %vm206_vm0, %v2616_v45 }
 0x3aa   :  { %v1285_v45 = vpop.xlane.xlu0 %1284 }
 0x3af   :  { %v2880_v46 = vpop.xlane.xlu1 %347 }
 0x3b0   :  { %2037 = vmatmul.msk.f32.vlgmr.msrb.gmra.mxu2 %vm206_vm0, %v2708_v29  ;;  %v1289_v29 = vsub.f32 %v2792_v39, %v1285_v45  ;;  %v2909_v39 = vpop.f32.mrf.mxu0 }
 0x3b1   :  { %v1498_v33 = vsel %vm206_vm0, %v2909_v39, -inf }
 0x3b7   :  { %v1085_v3 = vpop.xlane.xlu1 %1084 }
 0x3b8   :  { %v1089_v53 = vsub.f32 %v2779_v31, %v1085_v3  ;;  %2038 = vmatmul.msk.f32.gmra.mxu2 %vm206_vm0, %v2728_v13  ;;  %v1291_v31 = vmul.f32 1.442695, %v1289_v29  ;;  %v2912_v17 = vpop.f32.mrf.mxu0 }
 0x3b9   :  { %v1707_v19 = vsel %vm206_vm0, %v2912_v17, -inf }
 0x3ba   :  { %v1091_v6 = vmul.f32 1.442695, %v1089_v53 }
 0x3bc   :  { %2169 = vpow2.f32 %v1091_v6 }
 0x3bd   :  { %2171 = vpow2.f32 %v1093_v47 }
 0x3be   :  { %2173 = vpow2.f32 %v1291_v31 }
 0x3bf   :  { %v1288_v13 = vpop.xlane.xlu1 %1287 }
 0x3c0   :  { %2049 = vmatmul.msk.f32.vlgmr.msra.gmra.mxu2 %vm206_vm0, %v2640_v57  ;;  %v1290_v57 = vsub.f32 %v2799_v52, %v1288_v13  ;;  %v2920_v11 = vpop.f32.mrf.mxu0 }
 0x3c1   :  { %v1710_v32 = vsel %vm206_vm0, %v2920_v11, -inf }
 0x3c2   :  { %v2890_v49 = vpop.eup %2169  ;;  %v1293_v51 = vmul.f32 1.442695, %v1290_v57 }
 0x3c3   :  { %2009 = vmatmul.msk.f32.vlgmr.msra.gmra.mxu1 %vm206_vm0, %v2890_v49  ;;  %v2897_v38 = vpop.eup %2171 }
 0x3c4   :  { %v2174_v56 = vpop.eup %2173  ;;  %2175 = vpow2.f32 %v1293_v51 }
 0x3c5   :  { %v1295_v24 = vsel %vm206_vm0, %v2174_v56, 0.0 }
 0x3c7   :  { %v1497_v58 = vpop.xlane.xlu1 %1496 }
 0x3c8   :  { %2050 = vmatmul.msk.f32.gmra.mxu2 %vm206_vm0, %v2774_v18  ;;  %v1501_v8 = vsub.f32 %v2803_v59, %v1497_v58  ;;  %v2107_v59 = vpop.permute.xlu2 %2106 }
 0x3c9   :  { %v2108_v43 = vunpack.i.l.bf16 %v2107_v59  ;;  %v2109_v6 = vunpack.i.h.bf16 %v2107_v59 }
 0x3ca   :  { %v2903_v60 = vpop.eup %2175  ;;  %v1503_v36 = vmul.f32 1.442695, %v1501_v8 }
 0x3cb   :  { %2010 = vmatmul.msk.f32.gmra.mxu1 %vm206_vm0, %v2897_v38 }
 0x3cc   :  { %2177 = vpow2.f32 %v1503_v36 }
 0x3d2   :  { %v2958_v34 = vpop.eup %2177 }
 0x3d3   :  { %2021 = vmatmul.msk.f32.vlgmr.msrb.gmra.mxu1 %vm206_vm0, %v2174_v56  ;;  %v1507_v35 = vsel %vm206_vm0, %v2958_v34, 0.0 }
 0x3d7   :  { %v2970_v41 = vpop.xlane.xlu2 %350 }
 0x3db   :  { %2022 = vmatmul.msk.f32.gmra.mxu1 %vm206_vm0, %v2903_v60 }
 0x3eb   :  { %v2907_v18 = vpop.f32.mrf.mxu2 }
 0x3f3   :  { %v758_v2 = vpop.f32.mrf.mxu2 }
 0x3f4   :  { %v764_v7 = vsel %vm206_vm0, %v758_v2, -inf }
 0x3f5   :  { %765 = vmax.xlane.f32.xlu1 %v764_v7 }
 0x3fb   :  { %v2914_v52 = vpop.f32.mrf.mxu2 }
 0x3fc   :  { %v767_v22 = vsel %vm206_vm0, %v2914_v52, -inf }
 0x3fd   :  { %1708 = vmax.xlane.f32.xlu1 %v1707_v19  ;;  %768 = vmax.xlane.f32.xlu0 %v767_v22 }
 0x403   :  { %v2922_v62 = vpop.f32.mrf.mxu2 }
 0x404   :  { %v978_v30 = vsel %vm206_vm0, %v2922_v62, -inf }
 0x405   :  { %979 = vmax.xlane.f32.xlu2 %v978_v30  ;;  %1711 = vmax.xlane.f32.xlu1 %v1710_v32 }
 0x406   :  { %1499 = vmax.xlane.f32.xlu0 %v1498_v33 }
 0x40d   :  { %456 = vadd.xlane.f32.xlu1 %v455_v28  ;;  %v2114_v28 = vunpack.i.h.bf16 %v2852_v42 }
 0x415   :  { %670 = vadd.xlane.f32.xlu1 %v669_v25 }
 0x41a   :  { %2126 = vrot.lane.b32.xlu0 %v2758_v1, %s2379_s6 }
 0x41d   :  { %2121 = vrot.lane.b32.xlu2 %v2758_v1, %s2382_s9  ;;  %884 = vadd.xlane.f32.xlu1 %v883_v55 }
 0x422   :  { %2131 = vrot.lane.b32.xlu0 %v2758_v1, %s2383_s10 }
 0x425   :  { %459 = vadd.xlane.f32.xlu1 %v458_v54  ;;  %v1298_v54 = vsel %vm206_vm0, %v2903_v60, 0.0 }
 0x42a   :  { %2136 = vrot.lane.b32.xlu0 %v2758_v1, %s2384_s11  ;;  %v2954_v1 = vpop.f32.mrf.mxu2 }
 0x42b   :  { %v981_v27 = vsel %vm206_vm0, %v2954_v1, -inf }
 0x42d   :  { %673 = vadd.xlane.f32.xlu1 %v672_v14 }
 0x432   :  { %v2962_v37 = vpop.f32.mrf.mxu2 }
 0x433   :  { %v1175_v26 = vsel %vm206_vm0, %v2962_v37, -inf }
 0x435   :  { %887 = vadd.xlane.f32.xlu1 %v886_v63 }
 0x43a   :  { %v2966_v21 = vpop.f32.mrf.mxu2 }
 0x43b   :  { %v1178_v53 = vsel %vm206_vm0, %v2966_v21, -inf }
 0x43d   :  { %1296 = vadd.xlane.f32.xlu1 %v1295_v24 }
 0x442   :  { %v2972_v20 = vpop.f32.mrf.mxu2 }
 0x443   :  { %v1389_v7 = vsel %vm206_vm0, %v2972_v20, -inf }
 0x446   :  { %566 = vadd.xlane.f32.xlu2 %v565_v0 }
 0x44a   :  { %v2985_v51 = vpop.f32.mrf.mxu2 }
 0x452   :  { %v2999_v32 = vpop.f32.mrf.mxu2 }
 0x453   :  { %v1601_v63 = vsel %vm206_vm0, %v2999_v32, -inf }
 0x454   :  { %563 = vadd.xlane.f32.xlu0 %v562_v5 }
 0x45a   :  { %v3010_v24 = vpop.f32.mrf.mxu2 }
 0x45b   :  { %v1604_v60 = vsel %vm206_vm0, %v3010_v24, -inf }
 0x45c   :  { %1508 = vadd.xlane.f32.xlu0 %v1507_v35 }
 0x462   :  { %v3018_v8 = vpop.f32.mrf.mxu2 }
 0x463   :  { %v1813_v35 = vsel %vm206_vm0, %v3018_v8, -inf }
 0x464   :  { %982 = vmax.xlane.f32.xlu0 %v981_v27 }
 0x468   :  { %v766_v61 = vpop.xlane.xlu1 %765 }
 0x469   :  { %v770_v4 = vsub.f32 %v758_v2, %v766_v61 }
 0x46b   :  { %v772_v10 = vmul.f32 1.442695, %v770_v4  ;;  %v385_v4 = vpop.f32.mrf.mxu3 }
 0x46c   :  { %1176 = vmax.xlane.f32.xlu0 %v1175_v26 }
 0x46d   :  { %2179 = vpow2.f32 %v772_v10 }
 0x470   :  { %v1709_v15 = vpop.xlane.xlu1 %1708  ;;  %v769_v16 = vpop.xlane.xlu0 %768 }
 0x471   :  { %v1713_v9 = vsub.f32 %v2912_v17, %v1709_v15  ;;  %v771_v12 = vsub.f32 %v2914_v52, %v769_v16  ;;  %v706_v15 = vpop.f32.mrf.mxu1 }
 0x473   :  { %v2976_v23 = vpop.eup %2179  ;;  %v1715_v44 = vmul.f32 1.442695, %v1713_v9  ;;  %v774_v3 = vmul.f32 1.442695, %v771_v12  ;;  %v388_v9 = vpop.f32.mrf.mxu3 }
 0x474   :  { %1179 = vmax.xlane.f32.xlu0 %v1178_v53  ;;  %1991 = vmatmul.msk.f32.vlgmr.msrb.gmra.mxu3 %vm206_vm0, %v2976_v23 }
 0x475   :  { %2181 = vpow2.f32 %v1715_v44  ;;  %1223 = vmatpush.msrb.mxu3 %v2108_v43 }
 0x476   :  { %2183 = vpow2.f32 %v774_v3 }
 0x477   :  { %1224 = vmatpush.msrb.mxu3 %v2109_v6 }
 0x478   :  { %v980_v40 = vpop.xlane.xlu2 %979  ;;  %v1712_v47 = vpop.xlane.xlu1 %1711 }
 0x479   :  { %v984_v45 = vsub.f32 %v2922_v62, %v980_v40  ;;  %v1714_v29 = vsub.f32 %v2920_v11, %v1712_v47  ;;  %v1500_v31 = vpop.xlane.xlu0 %1499  ;;  %v2113_v11 = vunpack.i.l.bf16 %v2852_v42  ;;  %v1392_v62 = vsel %vm206_vm0, %v2985_v51, -inf }
 0x47a   :  { %v1502_v13 = vsub.f32 %v2909_v39, %v1500_v31 }
 0x47b   :  { %v2182_v57 = vpop.eup %2181  ;;  %v986_v56 = vmul.f32 1.442695, %v984_v45  ;;  %v1717_v2 = vmul.f32 1.442695, %v1714_v29  ;;  %v599_v6 = vpop.f32.mrf.mxu3 }
 0x47c   :  { %v2989_v17 = vpop.eup %2183  ;;  %v1505_v52 = vmul.f32 1.442695, %v1502_v13  ;;  %1390 = vmax.xlane.f32.xlu0 %v1389_v7  ;;  %v1719_v19 = vsel %vm206_vm0, %v2182_v57, 0.0 }
 0x47d   :  { %2185 = vpow2.f32 %v986_v56  ;;  %1992 = vmatmul.msk.f32.gmra.mxu3 %vm206_vm0, %v2989_v17  ;;  %1720 = vadd.xlane.f32.xlu2 %v1719_v19 }
 0x47e   :  { %2187 = vpow2.f32 %v1717_v2 }
 0x47f   :  { %2189 = vpow2.f32 %v1505_v52 }
 0x480   :  { %v457_v42 = vpop.xlane.xlu1 %456  ;;  %v2122_v3 = vpop.permute.xlu2 %2121 }
 0x481   :  { %2191 = vrcp.f32 %v457_v42 }
 0x483   :  { %v2994_v39 = vpop.eup %2185  ;;  %v602_v29 = vpop.f32.mrf.mxu3 }
 0x484   :  { %v2188_v22 = vpop.eup %2187 }
 0x485   :  { %v2190_v30 = vpop.eup %2189  ;;  %2003 = vmatmul.msk.f32.vlgmr.msra.gmra.mxu3 %vm206_vm0, %v2994_v39  ;;  %1393 = vmax.xlane.f32.xlu2 %v1392_v62  ;;  %v1722_v33 = vsel %vm206_vm0, %v2188_v22, 0.0 }
 0x486   :  { %1435 = vmatpush.msra.mxu3 %v2113_v11  ;;  %1723 = vadd.xlane.f32.xlu0 %v1722_v33  ;;  %v1510_v25 = vsel %vm206_vm0, %v2190_v30, 0.0  ;;  %v1095_v33 = vsel %vm206_vm0, %v2890_v49, 0.0 }
 0x487   :  { %1511 = vadd.xlane.f32.xlu1 %v1510_v25  ;;  %v2192_v27 = vpop.eup %2191 }
 0x488   :  { %1436 = vmatpush.msra.mxu3 %v2114_v28  ;;  %v671_v36 = vpop.xlane.xlu1 %670  ;;  %v498_v61 = vmul.f32 %v2192_v27, %v2734_v48  ;;  %v920_v48 = vpop.f32.mrf.mxu1 }
 0x489   :  { %2193 = vrcp.f32 %v671_v36 }
 0x48c   :  { %v2127_v55 = vpop.permute.xlu0 %2126 }
 0x48d   :  { %v2128_v14 = vunpack.i.l.bf16 %v2127_v55  ;;  %1299 = vadd.xlane.f32.xlu2 %v1298_v54  ;;  %v2129_v0 = vunpack.i.h.bf16 %v2127_v55 }
 0x48e   :  { %1602 = vmax.xlane.f32.xlu0 %v1601_v63 }
 0x48f   :  { %1541 = vmatpush.msra.mxu1 %v2128_v14  ;;  %v2194_v26 = vpop.eup %2193  ;;  %v776_v14 = vsel %vm206_vm0, %v2976_v23, 0.0  ;;  %v779_v23 = vsel %vm206_vm0, %v2989_v17, 0.0 }
 0x490   :  { %v885_v10 = vpop.xlane.xlu1 %884  ;;  %v712_v16 = vmul.f32 %v2194_v26, %v706_v15  ;;  %v3044_v54 = vpop.f32.mrf.mxu1 }
 0x491   :  { %1542 = vmatpush.msra.mxu1 %v2129_v0  ;;  %2195 = vrcp.f32 %v885_v10 }
 0x492   :  { %2033 = vmatmul.msk.f32.vlgmr.msra.gmra.mxu1 %vm206_vm0, %v2958_v34  ;;  %2197 = vrcp.f32 %v2880_v46 }
 0x493   :  { %2199 = vrcp.f32 %v2970_v41 }
 0x494   :  { %v3014_v58 = vpop.permute.xlu0 %2131 }
 0x495   :  { %1605 = vmax.xlane.f32.xlu2 %v1604_v60  ;;  %v2124_v60 = vunpack.i.h.bf16 %v2122_v3  ;;  %v2133_v26 = vunpack.i.l.bf16 %v3014_v58 }
 0x497   :  { %v2196_v12 = vpop.eup %2195 }
 0x498   :  { %v2198_v43 = vpop.eup %2197  ;;  %v926_v44 = vmul.f32 %v2196_v12, %v920_v48  ;;  %v460_v41 = vpop.xlane.xlu1 %459 }
 0x499   :  { %v391_v53 = vmul.f32 %v2198_v43, %v385_v4  ;;  %v2200_v40 = vpop.eup %2199  ;;  %v3051_v0 = vpop.f32.mrf.mxu1 }
 0x49a   :  { %2034 = vmatmul.msk.f32.gmra.mxu1 %vm206_vm0, %v2190_v30  ;;  %v392_v46 = vmul.f32 %v2200_v40, %v388_v9 }
 0x49c   :  { %v2137_v5 = vpop.permute.xlu0 %2136 }
 0x49d   :  { %v2138_v59 = vunpack.i.l.bf16 %v2137_v5  ;;  %1814 = vmax.xlane.f32.xlu2 %v1813_v35  ;;  %v2139_v34 = vunpack.i.h.bf16 %v2137_v5 }
 0x49f   :  { %1753 = vmatpush.msrb.mxu1 %v2138_v59 }
 0x4a0   :  { %v674_v7 = vpop.xlane.xlu1 %673 }
 0x4a1   :  { %1754 = vmatpush.msrb.mxu1 %v2139_v34  ;;  %v3062_v34 = vpop.f32.mrf.mxu1 }
 0x4a2   :  { %502 = vrot.lane.b32.xlu0 %v498_v61, %s2384_s11  ;;  %2045 = vmatmul.msk.f32.vlgmr.msrb.gmra.mxu1 %vm206_vm0, %v2182_v57  ;;  %v990_v61 = vsel %vm206_vm0, %v2994_v39, 0.0 }
 0x4a9   :  { %v3074_v9 = vpop.f32.mrf.mxu1 }
 0x4aa   :  { %716 = vrot.lane.b32.xlu0 %v712_v16, %s2379_s6  ;;  %2046 = vmatmul.msk.f32.gmra.mxu1 %vm206_vm0, %v2188_v22  ;;  %v2134_v16 = vunpack.i.h.bf16 %v3014_v58 }
 0x4b1   :  { %v1335_v40 = vpop.f32.mrf.mxu1 }
 0x4b2   :  { %930 = vrot.lane.b32.xlu0 %v926_v44, %s2378_s2 }
 0x4b5   :  { %395 = vrot.lane.b32.xlu2 %v391_v53, %s2383_s10 }
 0x4b9   :  { %v567_v47 = vpop.xlane.xlu2 %566 }
 0x4ba   :  { %2201 = vrcp.f32 %v567_v47  ;;  %397 = vrot.lane.b32.xlu0 %v392_v46, %s2383_s10 }
 0x4c0   :  { %v2202_v45 = vpop.eup %2201 }
 0x4c1   :  { %v606_v31 = vmul.f32 %v2202_v45, %v602_v29 }
 0x4c3   :  { %611 = vrot.lane.b32.xlu0 %v606_v31, %s2382_s9 }
 0x4c7   :  { %v564_v13 = vpop.xlane.xlu0 %563 }
 0x4c8   :  { %2203 = vrcp.f32 %v564_v13 }
 0x4c9   :  { %2205 = vrcp.f32 %v460_v41 }
 0x4ca   :  { %2207 = vrcp.f32 %v674_v7 }
 0x4ce   :  { %v2204_v57 = vpop.eup %2203 }
 0x4cf   :  { %v3034_v56 = vpop.xlane.xlu0 %1508  ;;  %v605_v2 = vmul.f32 %v2204_v57, %v599_v6  ;;  %v2206_v52 = vpop.eup %2205 }
 0x4d0   :  { %v499_v22 = vmul.f32 %v2206_v52, %v2739_v50  ;;  %v2208_v30 = vpop.eup %2207  ;;  %v3081_v6 = vpop.f32.mrf.mxu2 }
 0x4d1   :  { %609 = vrot.lane.b32.xlu1 %v605_v2, %s2382_s9  ;;  %v713_v25 = vmul.f32 %v2208_v30, %v2907_v18  ;;  %v1816_v45 = vsel %vm206_vm0, %v3081_v6, -inf }
 0x4d7   :  { %v983_v19 = vpop.xlane.xlu0 %982 }
 0x4d8   :  { %v985_v11 = vsub.f32 %v2954_v1, %v983_v19 }
 0x4d9   :  { %504 = vrot.lane.b32.xlu1 %v499_v22, %s2384_s11  ;;  %v888_v22 = vpop.xlane.xlu1 %887 }
 0x4da   :  { %v988_v62 = vmul.f32 1.442695, %v985_v11 }
 0x4dc   :  { %2209 = vpow2.f32 %v988_v62 }
 0x4de   :  { %1096 = vadd.xlane.f32.xlu2 %v1095_v33 }
 0x4df   :  { %v1177_v28 = vpop.xlane.xlu0 %1176 }
 0x4e0   :  { %v1181_v55 = vsub.f32 %v2962_v37, %v1177_v28  ;;  %v2123_v37 = vunpack.i.l.bf16 %v2122_v3 }
 0x4e1   :  { %718 = vrot.lane.b32.xlu1 %v713_v25, %s2379_s6 }
 0x4e2   :  { %v2210_v50 = vpop.eup %2209  ;;  %v1183_v1 = vmul.f32 1.442695, %v1181_v55 }
 0x4e3   :  { %2004 = vmatmul.msk.f32.gmra.mxu3 %vm206_vm0, %v2210_v50  ;;  %v993_v39 = vsel %vm206_vm0, %v2210_v50, 0.0  ;;  %v1297_v50 = vpop.xlane.xlu1 %1296 }
 0x4e4   :  { %2211 = vpow2.f32 %v1183_v1 }
 0x4e6   :  { %777 = vadd.xlane.f32.xlu2 %v776_v14 }
 0x4e7   :  { %v1180_v49 = vpop.xlane.xlu0 %1179 }
 0x4e8   :  { %v1182_v63 = vsub.f32 %v2966_v21, %v1180_v49 }
 0x4ea   :  { %v2212_v18 = vpop.eup %2211  ;;  %v1185_v42 = vmul.f32 1.442695, %v1182_v63 }
 0x4eb   :  { %2015 = vmatmul.msk.f32.vlgmr.msrb.gmra.mxu3 %vm206_vm0, %v2212_v18  ;;  %v1187_v36 = vsel %vm206_vm0, %v2212_v18, 0.0 }
 0x4ec   :  { %2213 = vpow2.f32 %v1185_v42  ;;  %1647 = vmatpush.msrb.mxu3 %v2123_v37 }
 0x4ed   :  { %1188 = vadd.xlane.f32.xlu0 %v1187_v36 }
 0x4ee   :  { %1648 = vmatpush.msrb.mxu3 %v2124_v60  ;;  %780 = vadd.xlane.f32.xlu2 %v779_v23 }
 0x4ef   :  { %v1391_v5 = vpop.xlane.xlu0 %1390 }
 0x4f0   :  { %v1395_v21 = vsub.f32 %v2972_v20, %v1391_v5  ;;  %v3058_v35 = vpop.xlane.xlu2 %1720 }
 0x4f2   :  { %v3060_v27 = vpop.eup %2213  ;;  %v1397_v59 = vmul.f32 1.442695, %v1395_v21 }
 0x4f3   :  { %2016 = vmatmul.msk.f32.gmra.mxu3 %vm206_vm0, %v3060_v27 }
 0x4f4   :  { %2215 = vpow2.f32 %v1397_v59 }
 0x4f6   :  { %991 = vadd.xlane.f32.xlu2 %v990_v61 }
 0x4f7   :  { %v813_v5 = vpop.f32.mrf.mxu3 }
 0x4f8   :  { %v1394_v17 = vpop.xlane.xlu2 %1393 }
 0x4f9   :  { %v1396_v4 = vsub.f32 %v2985_v51, %v1394_v17  ;;  %v3069_v10 = vpop.xlane.xlu0 %1723 }
 0x4fa   :  { %v2216_v20 = vpop.eup %2215  ;;  %v1512_v1 = vpop.xlane.xlu1 %1511 }
 0x4fb   :  { %v1399_v15 = vmul.f32 1.442695, %v1396_v4  ;;  %2027 = vmatmul.msk.f32.vlgmr.msra.gmra.mxu3 %vm206_vm0, %v2216_v20  ;;  %v1401_v58 = vsel %vm206_vm0, %v2216_v20, 0.0 }
 0x4fc   :  { %1859 = vmatpush.msra.mxu3 %v2133_v26 }
 0x4fd   :  { %2217 = vpow2.f32 %v1399_v15 }
 0x4fe   :  { %1860 = vmatpush.msra.mxu3 %v2134_v16  ;;  %994 = vadd.xlane.f32.xlu2 %v993_v39 }
 0x500   :  { %v1300_v12 = vpop.xlane.xlu2 %1299  ;;  %v816_v20 = vpop.f32.mrf.mxu3 }
 0x501   :  { %2219 = vrcp.f32 %v1300_v12  ;;  %v1603_v51 = vpop.xlane.xlu0 %1602 }
 0x502   :  { %v1607_v48 = vsub.f32 %v2999_v32, %v1603_v51 }
 0x503   :  { %v2218_v43 = vpop.eup %2217 }
 0x504   :  { %v1609_v44 = vmul.f32 1.442695, %v1607_v48  ;;  %2028 = vmatmul.msk.f32.gmra.mxu3 %vm206_vm0, %v2218_v43  ;;  %v1404_v3 = vsel %vm206_vm0, %v2218_v43, 0.0 }
 0x505   :  { %1405 = vadd.xlane.f32.xlu0 %v1404_v3 }
 0x506   :  { %2221 = vpow2.f32 %v1609_v44  ;;  %1402 = vadd.xlane.f32.xlu2 %v1401_v58 }
 0x507   :  { %v2220_v53 = vpop.eup %2219  ;;  %2223 = vrcp.f32 %v3034_v56 }
 0x508   :  { %v1606_v46 = vpop.xlane.xlu2 %1605  ;;  %v3083_v47 = vmul.f32 %v2220_v53, %v1335_v40  ;;  %v1027_v3 = vpop.f32.mrf.mxu3  ;;  %v1098_v53 = vsel %vm206_vm0, %v2897_v38, 0.0 }
 0x509   :  { %v1608_v32 = vsub.f32 %v3010_v24, %v1606_v46 }
 0x50b   :  { %v1611_v29 = vmul.f32 1.442695, %v1608_v32  ;;  %1817 = vmax.xlane.f32.xlu1 %v1816_v45 }
 0x50c   :  { %v2222_v31 = vpop.eup %2221 }
 0x50d   :  { %2225 = vpow2.f32 %v1611_v29  ;;  %2039 = vmatmul.msk.f32.vlgmr.msrb.gmra.mxu3 %vm206_vm0, %v2222_v31  ;;  %v2224_v13 = vpop.eup %2223  ;;  %v1613_v42 = vsel %vm206_vm0, %v2222_v31, 0.0 }
 0x50f   :  { %v1544_v41 = vpop.f32.mrf.mxu1 }
 0x510   :  { %v3090_v57 = vmul.f32 %v2224_v13, %v1544_v41  ;;  %v1815_v2 = vpop.xlane.xlu2 %1814 }
 0x511   :  { %v1819_v7 = vsub.f32 %v3018_v8, %v1815_v2 }
 0x513   :  { %v2226_v52 = vpop.eup %2225  ;;  %v1821_v56 = vmul.f32 1.442695, %v1819_v7 }
 0x514   :  { %v503_v19 = vpop.permute.xlu0 %502  ;;  %v1616_v24 = vsel %vm206_vm0, %v2226_v52, 0.0 }
 0x515   :  { %2227 = vpow2.f32 %v1821_v56  ;;  %2040 = vmatmul.msk.f32.gmra.mxu3 %vm206_vm0, %v2226_v52  ;;  %1617 = vadd.xlane.f32.xlu2 %v1616_v24 }
 0x516   :  { %2229 = vrcp.f32 %v888_v22 }
 0x517   :  { %v1547_v61 = vpop.f32.mrf.mxu1 }
 0x518   :  { %v396_v11 = vpop.permute.xlu2 %395 }
 0x519   :  { %402 = vst.msk [vmem:[#allocation2] sm:$0xff] %vm401_vm1, %v396_v11 }
 0x51a   :  { %509 = vst.msk [vmem:[#allocation2] sm:$0xff] %vm508_vm2, %v503_v19 }
 0x51b   :  { %v2228_v62 = vpop.eup %2227 }
 0x51c   :  { %v717_v8 = vpop.permute.xlu0 %716  ;;  %v1825_v30 = vsel %vm206_vm0, %v2228_v62, 0.0  ;;  %v2230_v33 = vpop.eup %2229 }
 0x51d   :  { %2051 = vmatmul.msk.f32.vlgmr.msra.gmra.mxu3 %vm206_vm0, %v2228_v62  ;;  %1826 = vadd.xlane.f32.xlu0 %v1825_v30  ;;  %v927_v28 = vmul.f32 %v2230_v33, %v3044_v54  ;;  %v1190_v54 = vsel %vm206_vm0, %v3060_v27, 0.0 }
 0x524   :  { %932 = vrot.lane.b32.xlu1 %v927_v28, %s2378_s2  ;;  %v3101_v25 = vpop.permute.xlu0 %930 }
 0x52c   :  { %v398_v55 = vpop.permute.xlu0 %397 }
 0x52d   :  { %403 = vst.msk [vmem:[#allocation2 + $0x8] sm:$0xff] %vm401_vm1, %v398_v55 }
 0x535   :  { %v612_v63 = vpop.permute.xlu0 %611 }
 0x543   :  { %v610_v14 = vpop.permute.xlu1 %609 }
 0x544   :  { %616 = vst.msk [vmem:[#allocation2] sm:$0xff] %vm615_vm3, %v610_v14 }
 0x545   :  { %723 = vst.msk [vmem:[#allocation2] sm:$0xff] %vm722_vm4, %v717_v8 }
 0x54b   :  { %v505_v49 = vpop.permute.xlu1 %504 }
 0x54c   :  { %510 = vst.msk [vmem:[#allocation2 + $0x8] sm:$0xff] %vm508_vm2, %v505_v49 }
 0x54d   :  { %617 = vst.msk [vmem:[#allocation2 + $0x8] sm:$0xff] %vm615_vm3, %v612_v63 }
 0x54e   :  { %1191 = vadd.xlane.f32.xlu1 %v1190_v54 }
 0x551   :  { %v1097_v18 = vpop.xlane.xlu2 %1096 }
 0x552   :  { %2231 = vrcp.f32 %v1097_v18 }
 0x553   :  { %v719_v37 = vpop.permute.xlu1 %718 }
 0x554   :  { %724 = vst.msk [vmem:[#allocation2 + $0x8] sm:$0xff] %vm722_vm4, %v719_v37 }
 0x556   :  { %1614 = vadd.xlane.f32.xlu1 %v1613_v42 }
 0x558   :  { %v2232_v60 = vpop.eup %2231 }
 0x559   :  { %v1132_v36 = vmul.f32 %v2232_v60, %v3051_v0  ;;  %v778_v23 = vpop.xlane.xlu2 %777  ;;  %v1756_v0 = vpop.f32.mrf.mxu1 }
 0x55a   :  { %2233 = vrcp.f32 %v778_v23 }
 0x55b   :  { %1134 = vst.msk [vmem:[#allocation2 + $0x10] sm:$0xff] %vm206_vm0, %v1132_v36  ;;  %2235 = vrcp.f32 %v1297_v50  ;;  %v1899_v36 = vld [vmem:[#allocation8 + $0x78] sm:$0xff] }
 0x55c   :  { %1904 = vmatpush.msra.mxu0 %v1899_v36 }
 0x560   :  { %v2234_v21 = vpop.eup %2233  ;;  %v1189_v38 = vpop.xlane.xlu0 %1188 }
 0x561   :  { %v781_v27 = vpop.xlane.xlu2 %780  ;;  %v819_v59 = vmul.f32 %v2234_v21, %v813_v5  ;;  %v2236_v17 = vpop.eup %2235  ;;  %v1898_v21 = vld [vmem:[#allocation8 + $0x70] sm:$0xff] }
 0x562   :  { %2237 = vrcp.f32 %v781_v27  ;;  %v1338_v15 = vmul.f32 %v2236_v17, %v3074_v9  ;;  %1905 = vmatpush.msra.mxu0 %v1898_v21  ;;  %v1897_v27 = vld [vmem:[#allocation8 + $0x68] sm:$0xff]  ;;  %v1894_v17 = vld [vmem:[#allocation8 + $0x50] sm:$0xff] }
 0x563   :  { %823 = vrot.lane.b32.xlu2 %v819_v59, %s2381_s8  ;;  %2239 = vrcp.f32 %v3058_v35  ;;  %v1896_v59 = vld [vmem:[#allocation8 + $0x60] sm:$0xff] }
 0x564   :  { %2241 = vrcp.f32 %v1512_v1  ;;  %v1759_v1 = vpop.f32.mrf.mxu1  ;;  %1906 = vmatpush.msra.mxu0 %v1897_v27 }
 0x566   :  { %v1030_v58 = vpop.f32.mrf.mxu3  ;;  %1907 = vmatpush.msra.mxu0 %v1896_v59 }
 0x568   :  { %v2238_v4 = vpop.eup %2237 }
 0x569   :  { %v820_v26 = vmul.f32 %v2238_v4, %v816_v20  ;;  %v2240_v16 = vpop.eup %2239  ;;  %v992_v40 = vpop.xlane.xlu2 %991  ;;  %v1893_v4 = vld [vmem:[#allocation8 + $0x48] sm:$0xff]  ;;  %v1892_v20 = vld [vmem:[#allocation8 + $0x40] sm:$0xff] }
 0x56a   :  { %v1762_v39 = vmul.f32 %v2240_v16, %v1756_v0  ;;  %v2242_v12 = vpop.eup %2241  ;;  %v1889_v0 = vld [vmem:[#allocation8 + $0x28] sm:$0xff]  ;;  %v1888_v16 = vld [vmem:[#allocation8 + $0x20] sm:$0xff] }
 0x56b   :  { %825 = vrot.lane.b32.xlu0 %v820_v26, %s2381_s8  ;;  %1342 = vrot.lane.b32.xlu2 %v1338_v15, %s2384_s11  ;;  %v1551_v51 = vmul.f32 %v2242_v12, %v1547_v61  ;;  %v1895_v61 = vld [vmem:[#allocation8 + $0x58] sm:$0xff]  ;;  %v1890_v15 = vld [vmem:[#allocation8 + $0x30] sm:$0xff] }
 0x56c   :  { %1908 = vmatpush.msra.mxu0 %v1895_v61  ;;  %v1891_v26 = vld [vmem:[#allocation8 + $0x38] sm:$0xff]  ;;  %v1886_v12 = vld [vmem:[#allocation8 + $0x10] sm:$0xff] }
 0x56e   :  { %v1226_v46 = vpop.f32.mrf.mxu3  ;;  %1909 = vmatpush.msra.mxu0 %v1894_v17 }
 0x570   :  { %1910 = vmatpush.msra.mxu0 %v1893_v4 }
 0x571   :  { %v995_v32 = vpop.xlane.xlu2 %994 }
 0x572   :  { %1911 = vmatpush.msra.mxu0 %v1892_v20 }
 0x573   :  { %1766 = vrot.lane.b32.xlu2 %v1762_v39, %s2378_s2  ;;  %v1887_v39 = vld [vmem:[#allocation8 + $0x18] sm:$0xff] }
 0x574   :  { %1912 = vmatpush.msra.mxu0 %v1891_v26 }
 0x576   :  { %v1229_v45 = vpop.f32.mrf.mxu3  ;;  %1913 = vmatpush.msra.mxu0 %v1890_v15 }
 0x578   :  { %v1406_v22 = vpop.xlane.xlu0 %1405  ;;  %1914 = vmatpush.msra.mxu0 %v1889_v0 }
 0x579   :  { %v1403_v31 = vpop.xlane.xlu2 %1402 }
 0x57a   :  { %1915 = vmatpush.msra.mxu0 %v1888_v16 }
 0x57b   :  { %1556 = vrot.lane.b32.xlu2 %v1551_v51, %s2379_s6  ;;  %v1885_v51 = vld [vmem:[#allocation8 + $0x8] sm:$0xff] }
 0x57c   :  { %1916 = vmatpush.msra.mxu0 %v1887_v39 }
 0x57e   :  { %v1818_v48 = vpop.xlane.xlu1 %1817  ;;  %v1438_v41 = vpop.f32.mrf.mxu3  ;;  %1917 = vmatpush.msra.mxu0 %v1886_v12 }
 0x57f   :  { %v1820_v43 = vsub.f32 %v3081_v6, %v1818_v48 }
 0x580   :  { %1918 = vmatpush.msra.mxu0 %v1885_v51 }
 0x581   :  { %v1823_v9 = vmul.f32 1.442695, %v1820_v43  ;;  %v1884_v43 = vld [vmem:[#allocation8] sm:$0xff] }
 0x582   :  { %1919 = vmatpush.msra.mxu0 %v1884_v43 }
 0x583   :  { %2243 = vpow2.f32 %v1823_v9 }
 0x584   :  { %2245 = vrcp.f32 %v992_v40 }
 0x585   :  { %2247 = vrcp.f32 %v995_v32 }
 0x586   :  { %2249 = vrcp.f32 %v1189_v38 }
 0x587   :  { %2251 = vrcp.f32 %v1403_v31 }
 0x588   :  { %v1618_v7 = vpop.xlane.xlu2 %1617 }
 0x589   :  { %v2244_v35 = vpop.eup %2243 }
 0x58a   :  { %2052 = vmatmul.msk.f32.gmra.mxu3 %vm206_vm0, %v2244_v35  ;;  %v1828_v44 = vsel %vm206_vm0, %v2244_v35, 0.0  ;;  %v2246_v6 = vpop.eup %2245 }
 0x58b   :  { %1829 = vadd.xlane.f32.xlu1 %v1828_v44  ;;  %v1033_v29 = vmul.f32 %v2246_v6, %v1027_v3  ;;  %v2248_v13 = vpop.eup %2247 }
 0x58c   :  { %v1034_v2 = vmul.f32 %v2248_v13, %v1030_v58  ;;  %v2250_v52 = vpop.eup %2249 }
 0x58d   :  { %v1232_v19 = vmul.f32 %v2250_v52, %v1226_v46  ;;  %v2252_v24 = vpop.eup %2251 }
 0x58e   :  { %v1444_v62 = vmul.f32 %v2252_v24, %v1438_v41 }
 0x590   :  { %v1827_v63 = vpop.xlane.xlu0 %1826 }
 0x595   :  { %1099 = vadd.xlane.f32.xlu0 %v1098_v53 }
 0x596   :  { %v933_v56 = vpop.permute.xlu1 %932 }
 0x5a4   :  { %1554 = vrot.lane.b32.xlu1 %v3090_v57, %s2379_s6  ;;  %v1441_v57 = vpop.f32.mrf.mxu3 }
 0x5a9   :  { %1344 = vrot.lane.b32.xlu0 %v3083_v47, %s2384_s11 }
 0x5ac   :  { %1037 = vrot.lane.b32.xlu1 %v1033_v29, %s2380_s7  ;;  %v1650_v8 = vpop.f32.mrf.mxu3 }
 0x5b4   :  { %1039 = vrot.lane.b32.xlu1 %v1034_v2, %s2380_s7 }
 0x5bc   :  { %1236 = vrot.lane.b32.xlu1 %v1232_v19, %s2383_s10 }
 0x5bd   :  { %v824_v47 = vpop.permute.xlu2 %823 }
 0x5be   :  { %830 = vst.msk [vmem:[#allocation2] sm:$0xff] %vm829_vm5, %v824_v47 }
 0x5bf   :  { %937 = vst.msk [vmem:[#allocation2] sm:$0xff] %vm936_vm6, %v3101_v25  ;;  %v1653_v25 = vpop.f32.mrf.mxu3 }
 0x5c1   :  { %v1192_v11 = vpop.xlane.xlu1 %1191 }
 0x5c2   :  { %2253 = vrcp.f32 %v1192_v11  ;;  %v2140_v11 = vld [vmem:[%s3177_s3] ss:$0 sm:$0xff] }
 0x5c3   :  { %2255 = vrcp.f32 %v1406_v22 }
 0x5c4   :  { %1448 = vrot.lane.b32.xlu1 %v1444_v62, %s2382_s9  ;;  %2257 = vrcp.f32 %v3069_v10 }
 0x5c5   :  { %v1343_v35 = vpop.permute.xlu2 %1342 }
 0x5c7   :  { %v1862_v10 = vpop.f32.mrf.mxu3 }
 0x5c8   :  { %v2254_v30 = vpop.eup %2253 }
 0x5c9   :  { %v2256_v33 = vpop.eup %2255  ;;  %v1615_v28 = vpop.xlane.xlu1 %1614  ;;  %v1233_v55 = vmul.f32 %v2254_v30, %v1229_v45 }
 0x5ca   :  { %v1445_v50 = vmul.f32 %v2256_v33, %v1441_v57  ;;  %2259 = vrcp.f32 %v1615_v28  ;;  %v2258_v14 = vpop.eup %2257 }
 0x5cb   :  { %1238 = vrot.lane.b32.xlu2 %v1233_v55, %s2383_s10  ;;  %v1763_v54 = vmul.f32 %v2258_v14, %v1759_v1  ;;  %2261 = vrcp.f32 %v1827_v63 }
 0x5cc   :  { %1450 = vrot.lane.b32.xlu1 %v1445_v50, %s2382_s9  ;;  %2263 = vrcp.f32 %v1618_v7 }
 0x5cd   :  { %v1767_v46 = vpop.permute.xlu2 %1766 }
 0x5d0   :  { %v2260_v49 = vpop.eup %2259 }
 0x5d1   :  { %v1656_v18 = vmul.f32 %v2260_v49, %v1650_v8  ;;  %v2262_v37 = vpop.eup %2261 }
 0x5d2   :  { %v1868_v42 = vmul.f32 %v2262_v37, %v1862_v10  ;;  %v2264_v23 = vpop.eup %2263 }
 0x5d3   :  { %1768 = vrot.lane.b32.xlu2 %v1763_v54, %s2378_s2  ;;  %v1657_v5 = vmul.f32 %v2264_v23, %v1653_v25 }
 0x5d4   :  { %1660 = vrot.lane.b32.xlu1 %v1656_v18, %s2381_s8 }
 0x5d5   :  { %v1557_v6 = vpop.permute.xlu2 %1556 }
 0x5dc   :  { %1872 = vrot.lane.b32.xlu1 %v1868_v42, %s2380_s7 }
 0x5dd   :  { %v826_v60 = vpop.permute.xlu0 %825 }
 0x5de   :  { %831 = vst.msk [vmem:[#allocation2 + $0x8] sm:$0xff] %vm829_vm5, %v826_v60 }
 0x5df   :  { %938 = vst.msk [vmem:[#allocation2 + $0x8] sm:$0xff] %vm936_vm6, %v933_v56 }
 0x5e4   :  { %1662 = vrot.lane.b32.xlu1 %v1657_v5, %s2381_s8 }
 0x5fe   :  { %v1830_v48 = vpop.xlane.xlu1 %1829 }
 0x5ff   :  { %2265 = vrcp.f32 %v1830_v48 }
 0x605   :  { %v2266_v44 = vpop.eup %2265 }
 0x608   :  { %v1100_v9 = vpop.xlane.xlu0 %1099 }
 0x609   :  { %2267 = vrcp.f32 %v1100_v9 }
 0x60d   :  { %v1865_v3 = vpop.f32.mrf.mxu3 }
 0x60e   :  { %v1869_v58 = vmul.f32 %v2266_v44, %v1865_v3 }
 0x60f   :  { %v2268_v53 = vpop.eup %2267 }
 0x610   :  { %v1133_v40 = vmul.f32 %v2268_v53, %v3062_v34  ;;  %1874 = vrot.lane.b32.xlu0 %v1869_v58, %s2380_s7 }
 0x612   :  { %1135 = vst.msk [vmem:[#allocation2 + $0x18] sm:$0xff] %vm206_vm0, %v1133_v40 }
 0x616   :  { %v1555_v32 = vpop.permute.xlu1 %1554 }
 0x61b   :  { %v1345_v31 = vpop.permute.xlu0 %1344 }
 0x61e   :  { %v1038_v45 = vpop.permute.xlu1 %1037 }
 0x61f   :  { %1044 = vst.msk [vmem:[#allocation2] sm:$0xff] %vm1043_vm7, %v1038_v45 }
 0x625   :  { %v1239_v29 = vpop.permute.xlu2 %1238 }
 0x626   :  { %1243 = vst.msk [vmem:[#allocation2 + $0x18] sm:$0xff] %vm401_vm1, %v1239_v29  ;;  %v1040_v13 = vpop.permute.xlu1 %1039  ;;  %v1880_v38 = vld [vmem:[#allocation2] sm:$0xff] }
 0x627   :  { %1349 = vst.msk [vmem:[#allocation2 + $0x18] sm:$0xff] %vm508_vm2, %v1345_v31  ;;  %1920 = vmatmul.f32.vlgmr.msra.gmra.mxu0 %v1880_v38 }
 0x628   :  { %1045 = vst.msk [vmem:[#allocation2 + $0x8] sm:$0xff] %vm1043_vm7, %v1040_v13 }
 0x62d   :  { %v1769_v47 = vpop.permute.xlu2 %1768 }
 0x62e   :  { %v1237_v34 = vpop.permute.xlu1 %1236 }
 0x62f   :  { %1242 = vst.msk [vmem:[#allocation2 + $0x10] sm:$0xff] %vm401_vm1, %v1237_v34  ;;  %v1881_v41 = vld [vmem:[#allocation2 + $0x8] sm:$0xff] }
 0x630   :  { %1348 = vst.msk [vmem:[#allocation2 + $0x10] sm:$0xff] %vm508_vm2, %v1343_v35  ;;  %1923 = vmatmul.f32.gmra.mxu0 %v1881_v41 }
 0x636   :  { %v1449_v2 = vpop.permute.xlu1 %1448 }
 0x637   :  { %1454 = vst.msk [vmem:[#allocation2 + $0x10] sm:$0xff] %vm615_vm3, %v1449_v2 }
 0x638   :  { %1560 = vst.msk [vmem:[#allocation2 + $0x10] sm:$0xff] %vm722_vm4, %v1555_v32 }
 0x63e   :  { %v1451_v7 = vpop.permute.xlu1 %1450 }
 0x63f   :  { %1455 = vst.msk [vmem:[#allocation2 + $0x18] sm:$0xff] %vm615_vm3, %v1451_v7 }
 0x640   :  { %1561 = vst.msk [vmem:[#allocation2 + $0x18] sm:$0xff] %vm722_vm4, %v1557_v6 }
 0x646   :  { %v1661_v52 = vpop.permute.xlu1 %1660 }
 0x647   :  { %1666 = vst.msk [vmem:[#allocation2 + $0x10] sm:$0xff] %vm829_vm5, %v1661_v52 }
 0x648   :  { %1772 = vst.msk [vmem:[#allocation2 + $0x10] sm:$0xff] %vm936_vm6, %v1767_v46 }
 0x64e   :  { %v1873_v57 = vpop.permute.xlu1 %1872 }
 0x64f   :  { %1878 = vst.msk [vmem:[#allocation2 + $0x10] sm:$0xff] %vm1043_vm7, %v1873_v57 }
 0x656   :  { %v1663_v56 = vpop.permute.xlu1 %1662  ;;  %v1882_v19 = vld [vmem:[#allocation2 + $0x10] sm:$0xff] }
 0x657   :  { %1667 = vst.msk [vmem:[#allocation2 + $0x18] sm:$0xff] %vm829_vm5, %v1663_v56  ;;  %1926 = vmatmul.f32.gmra.mxu0 %v1882_v19 }
 0x658   :  { %1773 = vst.msk [vmem:[#allocation2 + $0x18] sm:$0xff] %vm936_vm6, %v1769_v47 }
 0x682   :  { %v1875_v24 = vpop.permute.xlu0 %1874 }
 0x683   :  { %1879 = vst.msk [vmem:[#allocation2 + $0x18] sm:$0xff] %vm1043_vm7, %v1875_v24 }
 0x68a   :  { %v1883_v22 = vld [vmem:[#allocation2 + $0x18] sm:$0xff] }
 0x68b   :  { %1929 = vmatmul.f32.gmra.mxu0 %v1883_v22 }
 0x6a4   :  { %v1921_v62 = vpop.f32.mrf.mxu0 }
 0x6a5   :  { %v1922_v8 = vadd.f32 %v2140_v11, %v1921_v62 }
 0x6a7   :  { %1933 = vst [vmem:[#allocation9] sm:$0xff] %v1922_v8 }
 0x6ad   :  { %v1924_v30 = vpop.f32.mrf.mxu0 }
 0x6ae   :  { %v1925_v33 = vadd.f32 %v2140_v11, %v1924_v30 }
 0x6b0   :  { %1934 = vst [vmem:[#allocation9 + $0x8] sm:$0xff] %v1925_v33 }
 0x6d4   :  { %v1927_v28 = vpop.f32.mrf.mxu0 }
 0x6d5   :  { %v1928_v55 = vadd.f32 %v2140_v11, %v1927_v28 }
 0x6d7   :  { %1935 = vst [vmem:[#allocation9 + $0x10] sm:$0xff] %v1928_v55 }
 0x708   :  { %v1930_v50 = vpop.f32.mrf.mxu0 }
 0x709   :  { %v1931_v25 = vadd.f32 %v2140_v11, %v1930_v50 }
 0x70b   :  { %1936 = vst [vmem:[#allocation9 + $0x18] sm:$0xff] %v1931_v25 }
 0x70c   :  { %1949 = dma.vmem_to_hbm [thread:$0]  %s1942_s15, 512, %s1944_s18, [#allocation5], %s2375_s27, %s2375_s27, %s2376_s28  }
 0x70d   :  { %2369 = dma.done.wait [#allocation5], 512  }
 0x70e   :  { %2370 = vsyncadd [#allocation5], 4294966784 }
 0x70f   :  { %1954 = vsyncpa [#allocation4], 1 }
 0x710   :  { %1955 = vsyncpa [#allocation7], 1 }
 0x711   :  { %1956 = vsyncpa [#allocation5], 1 }

</bundles_post_ra>
